<compile_context>
chip_gen: v7x
topology: tpu7x:2x2x1
jax: 0.10.0
libtpu: 0.0.40
codegen_flags: <defaults>
</compile_context>

<pallas_src>
from functools import partial

import jax
import jax.numpy as jnp
from jax.experimental import pallas as pl
from jax.experimental.pallas import tpu as pltpu


# ----------------------------------------------------------------------------
# In-kernel helpers
# ----------------------------------------------------------------------------
def _mish(v):
    # x * tanh(softplus(x)) == x * u / (u + 2)  with  u = e*(e+2), e = exp(x).
    e = jnp.exp(jnp.minimum(v, 30.0))
    u = e * (e + 2.0)
    return v * u * pl.reciprocal(u + 2.0, approx=True)


# ----------------------------------------------------------------------------
# Fused kernel: one grid step == BB batch samples, everything VMEM-resident
# ----------------------------------------------------------------------------
def _cond_res_block_kernel(
    x_ref, cond_ref, mprev_ref, mnext_ref, mcg_ref, mgc_ref,
    w1_ref, b1_ref, g1_ref, be1_ref,
    wc_ref, bc_ref,
    w2_ref, b2_ref, g2_ref, be2_ref,
    *rest,
    bb, t, cp, n_norm, eps, has_res,
):
    if has_res:
        wr_ref, br_ref, o_ref = rest
    else:
        (o_ref,) = rest

    m = bb * t
    cin = x_ref.shape[-1]
    x2 = x_ref[...].reshape(m, cin)              # (M, Cin)  bf16
    mprev = mprev_ref[...]                       # (M, 1)    f32 (0 at local t==0)
    mnext = mnext_ref[...]                       # (M, 1)    f32 (0 at local t==T-1)

    def conv3(h_lo, w_ref, b_ref):
        # 'same' Conv1d(k=3): out[t] = w0.h[t-1] + w1.h[t] + w2.h[t+1]
        y0 = jnp.dot(h_lo, w_ref[0], preferred_element_type=jnp.float32)
        y1 = jnp.dot(h_lo, w_ref[1], preferred_element_type=jnp.float32)
        y2 = jnp.dot(h_lo, w_ref[2], preferred_element_type=jnp.float32)
        out = (pltpu.roll(y0, 1, 0) * mprev          # y0 at t-1 (masked at t==0)
               + y1
               + pltpu.roll(y2, m - 1, 0) * mnext)   # y2 at t+1 (masked at t==T-1)
        return out + b_ref[...]

    def gnorm(h2, g_ref, be_ref):
        # Per-sample GroupNorm over (T, channels-in-group); padded channels are
        # excluded via the precomputed membership masks and the divisor n_norm.
        h3 = h2.reshape(bb, t, cp)
        s1 = jnp.sum(h3, axis=1)                               # (BB, Cp)
        s2 = jnp.sum(h3 * h3, axis=1)                          # (BB, Cp)
        mean_g = jnp.dot(s1, mcg_ref[...],
                         preferred_element_type=jnp.float32) / n_norm   # (BB, G)
        ex2_g = jnp.dot(s2, mcg_ref[...],
                        preferred_element_type=jnp.float32) / n_norm
        inv_g = jax.lax.rsqrt(ex2_g - mean_g * mean_g + eps)
        mean_c = jnp.dot(mean_g, mgc_ref[...],
                         preferred_element_type=jnp.float32)            # (BB, Cp)
        inv_c = jnp.dot(inv_g, mgc_ref[...],
                        preferred_element_type=jnp.float32)
        hn = (h3 - mean_c[:, None, :]) * inv_c[:, None, :]
        hn = hn * g_ref[...].reshape(1, 1, cp) + be_ref[...].reshape(1, 1, cp)
        return hn.reshape(m, cp)

    # blocks[0]: Conv1d -> GroupNorm -> Mish
    h = _mish(gnorm(conv3(x2, w1_ref, b1_ref), g1_ref, be1_ref))

    # cond_encoder: Mish -> Linear -> (scale, bias)   [single fused dot, all BB]
    c = _mish(cond_ref[...].reshape(bb, cond_ref.shape[-1]))
    emb = (jnp.dot(c.astype(x2.dtype), wc_ref[...],
                   preferred_element_type=jnp.float32) + bc_ref[...])   # (BB, 2Cp)
    scale, bias = emb[:, :cp], emb[:, cp:]
    h3 = h.reshape(bb, t, cp)
    h = (scale[:, None, :] * h3 + bias[:, None, :]).reshape(m, cp)

    # blocks[1]: Conv1d -> GroupNorm -> Mish
    h = _mish(gnorm(conv3(h.astype(x2.dtype), w2_ref, b2_ref), g2_ref, be2_ref))

    # residual (1x1 conv, or plain add in the true-identity / no-padding case)
    if has_res:
        res = jnp.dot(x2, wr_ref[...],
                      preferred_element_type=jnp.float32) + br_ref[...]
    else:
        res = x2.astype(jnp.float32)

    o_ref[...] = (h + res).reshape(bb, t, cp).astype(o_ref.dtype)


# ----------------------------------------------------------------------------
# Wrapper
# ----------------------------------------------------------------------------
def _pick_block_batch(b, t, target_rows=256):
    """Largest divisor BB of B with BB*T <= target; prefer >= 2 grid steps."""
    best = 1
    for cand in range(1, b + 1):
        if b % cand == 0 and cand * t <= target_rows:
            best = cand
    if b // best < 2:                       # keep both v7x TensorCores busy
        for cand in range(best - 1, 0, -1):
            if b % cand == 0 and b // cand >= 2:
                best = cand
                break
    return best


def conditional_residual_block_1d(x, cond, params, *, n_groups=8, eps=1e-5,
                                  compute_dtype=jnp.bfloat16):
    """x: (B, Cin, T), cond: (B, cond_dim) -> (B, Cout, T)."""
    b, cin, t = x.shape
    cond_dim = cond.shape[-1]
    cout = params["w1"].shape[-1]
    assert cout % n_groups == 0
    cp = ((cout + 127) // 128) * 128        # lane-dense (padded) output channels
    bb = _pick_block_batch(b, t)
    m = bb * t

    # --- activations (channel-last for the kernel) ---------------------------
    # TODO(synk): keeping the surrounding UNet channel-last would remove these
    # two wrapper-side HBM transpose passes; with the (B, C, T) module interface
    # they have to stay.
    xt = jnp.transpose(x, (0, 2, 1)).astype(compute_dtype)       # (B, T, Cin)
    cond3 = cond.reshape(b, 1, cond_dim).astype(jnp.float32)     # (B, 1, cond_dim)

    # --- weights: bf16 for the MXU, output channels zero-padded to Cp --------
    def pad_last(a, target):
        p = target - a.shape[-1]
        return a if p == 0 else jnp.pad(a, [(0, 0)] * (a.ndim - 1) + [(0, p)])

    w1 = pad_last(params["w1"], cp).astype(compute_dtype)                 # (3,Cin,Cp)
    w2 = pad_last(jnp.pad(params["w2"], ((0, 0), (0, cp - cout), (0, 0))),
                  cp).astype(compute_dtype)                               # (3,Cp,Cp)
    b1 = pad_last(params["b1"], cp).astype(jnp.float32)
    b2 = pad_last(params["b2"], cp).astype(jnp.float32)
    g1 = pad_last(params["g1"], cp).astype(jnp.float32)
    g2 = pad_last(params["g2"], cp).astype(jnp.float32)
    be1 = pad_last(params["beta1"], cp).astype(jnp.float32)
    be2 = pad_last(params["beta2"], cp).astype(jnp.float32)

    wc, bc = params["wc"], params["bc"]    # (cond_dim, 2*Cout), (1, 2*Cout)
    wc_p = jnp.concatenate([pad_last(wc[:, :cout], cp),
                            pad_last(wc[:, cout:], cp)], axis=-1).astype(compute_dtype)
    bc_p = jnp.concatenate([pad_last(bc[:, :cout], cp),
                            pad_last(bc[:, cout:], cp)], axis=-1).astype(jnp.float32)

    has_res = ("wr" in params) or (cin != cout) or (cp != cout)
    if has_res:
        if "wr" in params:                 # Conv1d(in, out, 1)
            wr = pad_last(params["wr"], cp)
            br = pad_last(params["br"], cp)
        else:                              # identity, but channel padding needed
            wr = jnp.eye(cin, cp, dtype=jnp.float32)
            br = jnp.zeros((1, cp), jnp.float32)
        wr = wr.astype(compute_dtype)
        br = br.astype(jnp.float32)

    # --- precomputed masks (constant-index inputs, VMEM resident) ------------
    r = jnp.arange(m)
    mprev = (r % t != 0).astype(jnp.float32).reshape(m, 1)
    mnext = (r % t != t - 1).astype(jnp.float32).reshape(m, 1)

    ch = jnp.arange(cp)
    member = (ch[:, None] // (cout // n_groups)) == jnp.arange(n_groups)[None, :]
    member = member & (ch[:, None] < cout)           # padded channels excluded
    m_cg = member.astype(jnp.float32)                # (Cp, G)
    m_gc = m_cg.T                                    # (G, Cp)

    def full(shape):
        nd = len(shape)
        return pl.BlockSpec(shape, lambda *_: (0,) * nd)

    in_specs = [
        pl.BlockSpec((bb, t, cin), lambda i: (i, 0, 0)),        # x block
        pl.BlockSpec((bb, 1, cond_dim), lambda i: (i, 0, 0)),   # cond block
        full((m, 1)), full((m, 1)),
        full((cp, n_groups)), full((n_groups, cp)),
        full((3, cin, cp)), full((1, cp)), full((1, cp)), full((1, cp)),
        full((cond_dim, 2 * cp)), full((1, 2 * cp)),
        full((3, cp, cp)), full((1, cp)), full((1, cp)), full((1, cp)),
    ]
    operands = [xt, cond3, mprev, mnext, m_cg, m_gc,
                w1, b1, g1, be1, wc_p, bc_p, w2, b2, g2, be2]
    if has_res:
        in_specs += [full((cin, cp)), full((1, cp))]
        operands += [wr, br]

    out = pl.pallas_call(
        partial(_cond_res_block_kernel, bb=bb, t=t, cp=cp,
                n_norm=float(t * (cout // n_groups)), eps=float(eps),
                has_res=has_res),
        out_shape=jax.ShapeDtypeStruct((b, t, cp), jnp.float32),
        grid=(b // bb,),
        in_specs=in_specs,
        out_specs=pl.BlockSpec((bb, t, cp), lambda i: (i, 0, 0)),
        compiler_params=pltpu.CompilerParams(
            dimension_semantics=("parallel",),
            vmem_limit_bytes=64 * 1024 * 1024),
    )(*operands)

    return jnp.transpose(out[:, :, :cout], (0, 2, 1))


# ----------------------------------------------------------------------------
# Parameters (synthetic, deterministic)
# ----------------------------------------------------------------------------
def init_params(key, cin, cout, cond_dim, kernel_size=3):
    ks = jax.random.split(key, 12)

    def n(k, shape, scale):
        return jax.random.normal(k, shape, jnp.float32) * scale

    p = {
        "w1": n(ks[0], (kernel_size, cin, cout), (1.0 / (kernel_size * cin)) ** 0.5),
        "b1": n(ks[1], (1, cout), 0.05),
        "g1": 1.0 + n(ks[2], (1, cout), 0.05),
        "beta1": n(ks[3], (1, cout), 0.05),
        "w2": n(ks[4], (kernel_size, cout, cout), (1.0 / (kernel_size * cout)) ** 0.5),
        "b2": n(ks[5], (1, cout), 0.05),
        "g2": 1.0 + n(ks[6], (1, cout), 0.05),
        "beta2": n(ks[7], (1, cout), 0.05),
        "wc": n(ks[8], (cond_dim, 2 * cout), (1.0 / cond_dim) ** 0.5),
        "bc": n(ks[9], (1, 2 * cout), 0.05),
    }
    if cin != cout:
        p["wr"] = n(ks[10], (cin, cout), (1.0 / cin) ** 0.5)
        p["br"] = n(ks[11], (1, cout), 0.05)
    return p


# ----------------------------------------------------------------------------
# Pure-JAX f32 reference (mirrors the PyTorch forward) for correctness checking
# ----------------------------------------------------------------------------
def _mish_ref(v):
    return v * jnp.tanh(jax.nn.softplus(v))


def reference_forward(x, cond, params, *, n_groups=8, eps=1e-5):
    b, cin, t = x.shape
    cout = params["w1"].shape[-1]
    xt = jnp.transpose(x, (0, 2, 1)).astype(jnp.float32)   # (B, T, Cin)

    def conv3(h, w, bias):
        hp = jnp.pad(h, ((0, 0), (1, 1), (0, 0)))
        out = sum(jnp.einsum("btc,cd->btd", hp[:, k:k + t, :], w[k]) for k in range(3))
        return out + bias

    def gnorm(h, gamma, beta):
        hg = h.reshape(b, t, n_groups, cout // n_groups)
        mean = hg.mean(axis=(1, 3), keepdims=True)
        var = hg.var(axis=(1, 3), keepdims=True)
        hn = ((hg - mean) / jnp.sqrt(var + eps)).reshape(b, t, cout)
        return hn * gamma + beta

    h = _mish_ref(gnorm(conv3(xt, params["w1"], params["b1"]),
                        params["g1"], params["beta1"]))
    emb = _mish_ref(cond.astype(jnp.float32)) @ params["wc"] + params["bc"]
    scale = emb[:, :cout][:, None, :]
    bias = emb[:, cout:][:, None, :]
    h = scale * h + bias
    h = _mish_ref(gnorm(conv3(h, params["w2"], params["b2"]),
                        params["g2"], params["beta2"]))
    if "wr" in params:
        res = jnp.einsum("btc,cd->btd", xt, params["wr"]) + params["br"]
    else:
        res = xt
    return jnp.transpose(h + res, (0, 2, 1))


# ----------------------------------------------------------------------------
if __name__ == "__main__":
    def run_case(name, b, cin, cout, t, cond_dim, n_groups, seed):
        key = jax.random.PRNGKey(seed)
        kp, kx, kc = jax.random.split(key, 3)
        params = init_params(kp, cin, cout, cond_dim)
        x = jax.random.normal(kx, (b, cin, t), jnp.float32)
        cond = jax.random.normal(kc, (b, cond_dim), jnp.float32)

        fwd = jax.jit(partial(conditional_residual_block_1d, n_groups=n_groups))
        out = jax.block_until_ready(fwd(x, cond, params))

        assert out.shape == (b, cout, t), (name, out.shape)
        assert out.dtype == jnp.float32, (name, out.dtype)
        assert bool(jnp.all(jnp.isfinite(out))), name

        ref = reference_forward(x, cond, params, n_groups=n_groups)
        max_err = float(jnp.max(jnp.abs(out - ref)))
        mean_err = float(jnp.mean(jnp.abs(out - ref)))
        scale = float(jnp.max(jnp.abs(ref))) + 1e-6
        # bf16 matmuls vs f32 reference -> relative tolerance
        assert max_err <= 0.04 * scale + 1e-3, (name, max_err, scale)
        assert mean_err <= 0.02, (name, mean_err)

    # projection-residual path: Cin!=Cout, channel padding 32->128, BB=2 batching
    run_case("proj", b=4, cin=16, cout=32, t=16, cond_dim=32, n_groups=8, seed=0)
    # identity-residual path: Cin==Cout==128 (lane-dense, no padding, no 1x1 conv)
    run_case("ident", b=2, cin=128, cout=128, t=16, cond_dim=64, n_groups=8, seed=1)

    print("KERNEL_OK")
</pallas_src>

<mosaic_0001>
module attributes {stable_mosaic.version = 11 : i64} {
  func.func @_cond_res_block_kernel(%arg0: i32, %arg1: memref<2x16x16xbf16, #tpu.memory_space<vmem>>, %arg2: memref<2x1x32xf32, #tpu.memory_space<vmem>>, %arg3: memref<32x1xf32, #tpu.memory_space<vmem>>, %arg4: memref<32x1xf32, #tpu.memory_space<vmem>>, %arg5: memref<128x8xf32, #tpu.memory_space<vmem>>, %arg6: memref<8x128xf32, #tpu.memory_space<vmem>>, %arg7: memref<3x16x128xbf16, #tpu.memory_space<vmem>>, %arg8: memref<1x128xf32, #tpu.memory_space<vmem>>, %arg9: memref<1x128xf32, #tpu.memory_space<vmem>>, %arg10: memref<1x128xf32, #tpu.memory_space<vmem>>, %arg11: memref<32x256xbf16, #tpu.memory_space<vmem>>, %arg12: memref<1x256xf32, #tpu.memory_space<vmem>>, %arg13: memref<3x128x128xbf16, #tpu.memory_space<vmem>>, %arg14: memref<1x128xf32, #tpu.memory_space<vmem>>, %arg15: memref<1x128xf32, #tpu.memory_space<vmem>>, %arg16: memref<1x128xf32, #tpu.memory_space<vmem>>, %arg17: memref<16x128xbf16, #tpu.memory_space<vmem>>, %arg18: memref<1x128xf32, #tpu.memory_space<vmem>>, %arg19: memref<2x16x128xf32, #tpu.memory_space<vmem>>) attributes {dimension_semantics = [#tpu.dimension_semantics<parallel>], iteration_bounds = array<i64: 2>, scalar_prefetch = 0 : i64, scratch_operands = 0 : i64, tpu.core_type = #tpu.core_type<tc>, window_params = [{transform_indices = @transform_0, window_bounds = array<i64: 2, 16, 16>}, {transform_indices = @transform_1, window_bounds = array<i64: 2, 1, 32>}, {pipeline_mode = #tpu.pipeline_mode<synchronous>, transform_indices = @transform_2, window_bounds = array<i64: 32, 1>}, {pipeline_mode = #tpu.pipeline_mode<synchronous>, transform_indices = @transform_3, window_bounds = array<i64: 32, 1>}, {pipeline_mode = #tpu.pipeline_mode<synchronous>, transform_indices = @transform_4, window_bounds = array<i64: 128, 8>}, {pipeline_mode = #tpu.pipeline_mode<synchronous>, transform_indices = @transform_5, window_bounds = array<i64: 8, 128>}, {pipeline_mode = #tpu.pipeline_mode<synchronous>, transform_indices = @transform_6, window_bounds = array<i64: 3, 16, 128>}, {pipeline_mode = #tpu.pipeline_mode<synchronous>, transform_indices = @transform_7, window_bounds = array<i64: 1, 128>}, {pipeline_mode = #tpu.pipeline_mode<synchronous>, transform_indices = @transform_8, window_bounds = array<i64: 1, 128>}, {pipeline_mode = #tpu.pipeline_mode<synchronous>, transform_indices = @transform_9, window_bounds = array<i64: 1, 128>}, {pipeline_mode = #tpu.pipeline_mode<synchronous>, transform_indices = @transform_10, window_bounds = array<i64: 32, 256>}, {pipeline_mode = #tpu.pipeline_mode<synchronous>, transform_indices = @transform_11, window_bounds = array<i64: 1, 256>}, {pipeline_mode = #tpu.pipeline_mode<synchronous>, transform_indices = @transform_12, window_bounds = array<i64: 3, 128, 128>}, {pipeline_mode = #tpu.pipeline_mode<synchronous>, transform_indices = @transform_13, window_bounds = array<i64: 1, 128>}, {pipeline_mode = #tpu.pipeline_mode<synchronous>, transform_indices = @transform_14, window_bounds = array<i64: 1, 128>}, {pipeline_mode = #tpu.pipeline_mode<synchronous>, transform_indices = @transform_15, window_bounds = array<i64: 1, 128>}, {pipeline_mode = #tpu.pipeline_mode<synchronous>, transform_indices = @transform_16, window_bounds = array<i64: 16, 128>}, {pipeline_mode = #tpu.pipeline_mode<synchronous>, transform_indices = @transform_17, window_bounds = array<i64: 1, 128>}, {transform_indices = @transform_18, window_bounds = array<i64: 2, 16, 128>}]} {
    %c0 = arith.constant 0 : index
    %c0_0 = arith.constant 0 : index
    %c0_1 = arith.constant 0 : index
    %0 = vector.load %arg1[%c0, %c0_0, %c0_1] : memref<2x16x16xbf16, #tpu.memory_space<vmem>>, vector<2x16x16xbf16>
    %1 = vector.shape_cast %0 : vector<2x16x16xbf16> to vector<32x16xbf16>
    %c0_2 = arith.constant 0 : index
    %c0_3 = arith.constant 0 : index
    %2 = vector.load %arg3[%c0_2, %c0_3] : memref<32x1xf32, #tpu.memory_space<vmem>>, vector<32x1xf32>
    %c0_4 = arith.constant 0 : index
    %c0_5 = arith.constant 0 : index
    %3 = vector.load %arg4[%c0_4, %c0_5] : memref<32x1xf32, #tpu.memory_space<vmem>>, vector<32x1xf32>
    %c0_6 = arith.constant 0 : index
    %c0_7 = arith.constant 0 : index
    %c0_8 = arith.constant 0 : index
    %4 = vector.load %arg7[%c0_6, %c0_7, %c0_8] : memref<3x16x128xbf16, #tpu.memory_space<vmem>>, vector<1x16x128xbf16>
    %5 = vector.shape_cast %4 : vector<1x16x128xbf16> to vector<16x128xbf16>
    %cst = arith.constant dense<0.000000e+00> : vector<32x128xf32>
    %6 = tpu.matmul %1, %5, %cst {dimension_numbers = #tpu.dot_dimension_numbers<[1], [0], [0], [1], [0, 0, 1, 1], [], []>} : vector<32x16xbf16>, vector<16x128xbf16>, vector<32x128xf32> -> vector<32x128xf32>
    %c1 = arith.constant 1 : index
    %c0_9 = arith.constant 0 : index
    %c0_10 = arith.constant 0 : index
    %7 = vector.load %arg7[%c1, %c0_9, %c0_10] : memref<3x16x128xbf16, #tpu.memory_space<vmem>>, vector<1x16x128xbf16>
    %8 = vector.shape_cast %7 : vector<1x16x128xbf16> to vector<16x128xbf16>
    %cst_11 = arith.constant dense<0.000000e+00> : vector<32x128xf32>
    %9 = tpu.matmul %1, %8, %cst_11 {dimension_numbers = #tpu.dot_dimension_numbers<[1], [0], [0], [1], [0, 0, 1, 1], [], []>} : vector<32x16xbf16>, vector<16x128xbf16>, vector<32x128xf32> -> vector<32x128xf32>
    %c2 = arith.constant 2 : index
    %c0_12 = arith.constant 0 : index
    %c0_13 = arith.constant 0 : index
    %10 = vector.load %arg7[%c2, %c0_12, %c0_13] : memref<3x16x128xbf16, #tpu.memory_space<vmem>>, vector<1x16x128xbf16>
    %11 = vector.shape_cast %10 : vector<1x16x128xbf16> to vector<16x128xbf16>
    %cst_14 = arith.constant dense<0.000000e+00> : vector<32x128xf32>
    %12 = tpu.matmul %1, %11, %cst_14 {dimension_numbers = #tpu.dot_dimension_numbers<[1], [0], [0], [1], [0, 0, 1, 1], [], []>} : vector<32x16xbf16>, vector<16x128xbf16>, vector<32x128xf32> -> vector<32x128xf32>
    %c1_i32 = arith.constant 1 : i32
    %13 = tpu.dynamic_rotate %6 by %c1_i32 dim 0 : vector<32x128xf32>, i32 -> vector<32x128xf32>
    %14 = vector.broadcast %2 : vector<32x1xf32> to vector<32x128xf32>
    %15 = arith.mulf %13, %14 : vector<32x128xf32>
    %16 = arith.addf %15, %9 : vector<32x128xf32>
    %c31_i32 = arith.constant 31 : i32
    %17 = tpu.dynamic_rotate %12 by %c31_i32 dim 0 : vector<32x128xf32>, i32 -> vector<32x128xf32>
    %18 = vector.broadcast %3 : vector<32x1xf32> to vector<32x128xf32>
    %19 = arith.mulf %17, %18 : vector<32x128xf32>
    %20 = arith.addf %16, %19 : vector<32x128xf32>
    %c0_15 = arith.constant 0 : index
    %c0_16 = arith.constant 0 : index
    %21 = vector.load %arg8[%c0_15, %c0_16] : memref<1x128xf32, #tpu.memory_space<vmem>>, vector<1x128xf32>
    %22 = vector.broadcast %21 : vector<1x128xf32> to vector<32x128xf32>
    %23 = arith.addf %20, %22 : vector<32x128xf32>
    %24 = vector.shape_cast %23 : vector<32x128xf32> to vector<2x16x128xf32>
    %cst_17 = arith.constant dense<0.000000e+00> : vector<2x128xf32>
    %25 = vector.multi_reduction <add>, %24, %cst_17 [1] : vector<2x16x128xf32> to vector<2x128xf32>
    %26 = arith.mulf %24, %24 : vector<2x16x128xf32>
    %cst_18 = arith.constant dense<0.000000e+00> : vector<2x128xf32>
    %27 = vector.multi_reduction <add>, %26, %cst_18 [1] : vector<2x16x128xf32> to vector<2x128xf32>
    %c0_19 = arith.constant 0 : index
    %c0_20 = arith.constant 0 : index
    %28 = vector.load %arg5[%c0_19, %c0_20] : memref<128x8xf32, #tpu.memory_space<vmem>>, vector<128x8xf32>
    %cst_21 = arith.constant dense<0.000000e+00> : vector<2x8xf32>
    %29 = tpu.matmul %25, %28, %cst_21 {dimension_numbers = #tpu.dot_dimension_numbers<[1], [0], [0], [1], [0, 0, 1, 1], [], []>} : vector<2x128xf32>, vector<128x8xf32>, vector<2x8xf32> -> vector<2x8xf32>
    %cst_22 = arith.constant 6.400000e+01 : f32
    %30 = vector.broadcast %cst_22 : f32 to vector<2x8xf32>
    %31 = arith.divf %29, %30 : vector<2x8xf32>
    %c0_23 = arith.constant 0 : index
    %c0_24 = arith.constant 0 : index
    %32 = vector.load %arg5[%c0_23, %c0_24] : memref<128x8xf32, #tpu.memory_space<vmem>>, vector<128x8xf32>
    %cst_25 = arith.constant dense<0.000000e+00> : vector<2x8xf32>
    %33 = tpu.matmul %27, %32, %cst_25 {dimension_numbers = #tpu.dot_dimension_numbers<[1], [0], [0], [1], [0, 0, 1, 1], [], []>} : vector<2x128xf32>, vector<128x8xf32>, vector<2x8xf32> -> vector<2x8xf32>
    %cst_26 = arith.constant 6.400000e+01 : f32
    %34 = vector.broadcast %cst_26 : f32 to vector<2x8xf32>
    %35 = arith.divf %33, %34 : vector<2x8xf32>
    %36 = arith.mulf %31, %31 : vector<2x8xf32>
    %37 = arith.subf %35, %36 : vector<2x8xf32>
    %cst_27 = arith.constant 9.99999974E-6 : f32
    %38 = vector.broadcast %cst_27 : f32 to vector<2x8xf32>
    %39 = arith.addf %37, %38 : vector<2x8xf32>
    %40 = math.rsqrt %39 : vector<2x8xf32>
    %c0_28 = arith.constant 0 : index
    %c0_29 = arith.constant 0 : index
    %41 = vector.load %arg6[%c0_28, %c0_29] : memref<8x128xf32, #tpu.memory_space<vmem>>, vector<8x128xf32>
    %cst_30 = arith.constant dense<0.000000e+00> : vector<2x128xf32>
    %42 = tpu.matmul %31, %41, %cst_30 {dimension_numbers = #tpu.dot_dimension_numbers<[1], [0], [0], [1], [0, 0, 1, 1], [], []>} : vector<2x8xf32>, vector<8x128xf32>, vector<2x128xf32> -> vector<2x128xf32>
    %c0_31 = arith.constant 0 : index
    %c0_32 = arith.constant 0 : index
    %43 = vector.load %arg6[%c0_31, %c0_32] : memref<8x128xf32, #tpu.memory_space<vmem>>, vector<8x128xf32>
    %cst_33 = arith.constant dense<0.000000e+00> : vector<2x128xf32>
    %44 = tpu.matmul %40, %43, %cst_33 {dimension_numbers = #tpu.dot_dimension_numbers<[1], [0], [0], [1], [0, 0, 1, 1], [], []>} : vector<2x8xf32>, vector<8x128xf32>, vector<2x128xf32> -> vector<2x128xf32>
    %45 = vector.shape_cast %42 : vector<2x128xf32> to vector<2x1x128xf32>
    %46 = vector.broadcast %45 : vector<2x1x128xf32> to vector<2x16x128xf32>
    %47 = arith.subf %24, %46 : vector<2x16x128xf32>
    %48 = vector.shape_cast %44 : vector<2x128xf32> to vector<2x1x128xf32>
    %49 = vector.broadcast %48 : vector<2x1x128xf32> to vector<2x16x128xf32>
    %50 = arith.mulf %47, %49 : vector<2x16x128xf32>
    %c0_34 = arith.constant 0 : index
    %c0_35 = arith.constant 0 : index
    %51 = vector.load %arg9[%c0_34, %c0_35] : memref<1x128xf32, #tpu.memory_space<vmem>>, vector<1x128xf32>
    %52 = vector.shape_cast %51 : vector<1x128xf32> to vector<1x1x128xf32>
    %53 = vector.broadcast %52 : vector<1x1x128xf32> to vector<2x16x128xf32>
    %54 = arith.mulf %50, %53 : vector<2x16x128xf32>
    %c0_36 = arith.constant 0 : index
    %c0_37 = arith.constant 0 : index
    %55 = vector.load %arg10[%c0_36, %c0_37] : memref<1x128xf32, #tpu.memory_space<vmem>>, vector<1x128xf32>
    %56 = vector.shape_cast %55 : vector<1x128xf32> to vector<1x1x128xf32>
    %57 = vector.broadcast %56 : vector<1x1x128xf32> to vector<2x16x128xf32>
    %58 = arith.addf %54, %57 : vector<2x16x128xf32>
    %59 = vector.shape_cast %58 : vector<2x16x128xf32> to vector<32x128xf32>
    %cst_38 = arith.constant 3.000000e+01 : f32
    %60 = vector.broadcast %cst_38 : f32 to vector<32x128xf32>
    %61 = arith.minimumf %59, %60 : vector<32x128xf32>
    %62 = math.exp %61 : vector<32x128xf32>
    %cst_39 = arith.constant 2.000000e+00 : f32
    %63 = vector.broadcast %cst_39 : f32 to vector<32x128xf32>
    %64 = arith.addf %62, %63 : vector<32x128xf32>
    %65 = arith.mulf %62, %64 : vector<32x128xf32>
    %66 = arith.mulf %59, %65 : vector<32x128xf32>
    %cst_40 = arith.constant 2.000000e+00 : f32
    %67 = vector.broadcast %cst_40 : f32 to vector<32x128xf32>
    %68 = arith.addf %65, %67 : vector<32x128xf32>
    %69 = tpu.reciprocal %68 {approx = true} : vector<32x128xf32> -> vector<32x128xf32>
    %70 = arith.mulf %66, %69 : vector<32x128xf32>
    %c0_41 = arith.constant 0 : index
    %c0_42 = arith.constant 0 : index
    %c0_43 = arith.constant 0 : index
    %71 = vector.load %arg2[%c0_41, %c0_42, %c0_43] : memref<2x1x32xf32, #tpu.memory_space<vmem>>, vector<2x1x32xf32>
    %72 = vector.shape_cast %71 : vector<2x1x32xf32> to vector<2x32xf32>
    %cst_44 = arith.constant 3.000000e+01 : f32
    %73 = vector.broadcast %cst_44 : f32 to vector<2x32xf32>
    %74 = arith.minimumf %72, %73 : vector<2x32xf32>
    %75 = math.exp %74 : vector<2x32xf32>
    %cst_45 = arith.constant 2.000000e+00 : f32
    %76 = vector.broadcast %cst_45 : f32 to vector<2x32xf32>
    %77 = arith.addf %75, %76 : vector<2x32xf32>
    %78 = arith.mulf %75, %77 : vector<2x32xf32>
    %79 = arith.mulf %72, %78 : vector<2x32xf32>
    %cst_46 = arith.constant 2.000000e+00 : f32
    %80 = vector.broadcast %cst_46 : f32 to vector<2x32xf32>
    %81 = arith.addf %78, %80 : vector<2x32xf32>
    %82 = tpu.reciprocal %81 {approx = true} : vector<2x32xf32> -> vector<2x32xf32>
    %83 = arith.mulf %79, %82 : vector<2x32xf32>
    %84 = arith.truncf %83 : vector<2x32xf32> to vector<2x32xbf16>
    %c0_47 = arith.constant 0 : index
    %c0_48 = arith.constant 0 : index
    %85 = vector.load %arg11[%c0_47, %c0_48] : memref<32x256xbf16, #tpu.memory_space<vmem>>, vector<32x256xbf16>
    %cst_49 = arith.constant dense<0.000000e+00> : vector<2x256xf32>
    %86 = tpu.matmul %84, %85, %cst_49 {dimension_numbers = #tpu.dot_dimension_numbers<[1], [0], [0], [1], [0, 0, 1, 1], [], []>} : vector<2x32xbf16>, vector<32x256xbf16>, vector<2x256xf32> -> vector<2x256xf32>
    %c0_50 = arith.constant 0 : index
    %c0_51 = arith.constant 0 : index
    %87 = vector.load %arg12[%c0_50, %c0_51] : memref<1x256xf32, #tpu.memory_space<vmem>>, vector<1x256xf32>
    %88 = vector.broadcast %87 : vector<1x256xf32> to vector<2x256xf32>
    %89 = arith.addf %86, %88 : vector<2x256xf32>
    %90 = vector.extract_strided_slice %89 {offsets = [0, 0], sizes = [2, 128], strides = [1, 1]} : vector<2x256xf32> to vector<2x128xf32>
    %91 = vector.extract_strided_slice %89 {offsets = [0, 128], sizes = [2, 128], strides = [1, 1]} : vector<2x256xf32> to vector<2x128xf32>
    %92 = vector.shape_cast %70 : vector<32x128xf32> to vector<2x16x128xf32>
    %93 = vector.shape_cast %90 : vector<2x128xf32> to vector<2x1x128xf32>
    %94 = vector.broadcast %93 : vector<2x1x128xf32> to vector<2x16x128xf32>
    %95 = arith.mulf %94, %92 : vector<2x16x128xf32>
    %96 = vector.shape_cast %91 : vector<2x128xf32> to vector<2x1x128xf32>
    %97 = vector.broadcast %96 : vector<2x1x128xf32> to vector<2x16x128xf32>
    %98 = arith.addf %95, %97 : vector<2x16x128xf32>
    %99 = vector.shape_cast %98 : vector<2x16x128xf32> to vector<32x128xf32>
    %100 = arith.truncf %99 : vector<32x128xf32> to vector<32x128xbf16>
    %c0_52 = arith.constant 0 : index
    %c0_53 = arith.constant 0 : index
    %c0_54 = arith.constant 0 : index
    %101 = vector.load %arg13[%c0_52, %c0_53, %c0_54] : memref<3x128x128xbf16, #tpu.memory_space<vmem>>, vector<1x128x128xbf16>
    %102 = vector.shape_cast %101 : vector<1x128x128xbf16> to vector<128x128xbf16>
    %cst_55 = arith.constant dense<0.000000e+00> : vector<32x128xf32>
    %103 = tpu.matmul %100, %102, %cst_55 {dimension_numbers = #tpu.dot_dimension_numbers<[1], [0], [0], [1], [0, 0, 1, 1], [], []>} : vector<32x128xbf16>, vector<128x128xbf16>, vector<32x128xf32> -> vector<32x128xf32>
    %c1_56 = arith.constant 1 : index
    %c0_57 = arith.constant 0 : index
    %c0_58 = arith.constant 0 : index
    %104 = vector.load %arg13[%c1_56, %c0_57, %c0_58] : memref<3x128x128xbf16, #tpu.memory_space<vmem>>, vector<1x128x128xbf16>
    %105 = vector.shape_cast %104 : vector<1x128x128xbf16> to vector<128x128xbf16>
    %cst_59 = arith.constant dense<0.000000e+00> : vector<32x128xf32>
    %106 = tpu.matmul %100, %105, %cst_59 {dimension_numbers = #tpu.dot_dimension_numbers<[1], [0], [0], [1], [0, 0, 1, 1], [], []>} : vector<32x128xbf16>, vector<128x128xbf16>, vector<32x128xf32> -> vector<32x128xf32>
    %c2_60 = arith.constant 2 : index
    %c0_61 = arith.constant 0 : index
    %c0_62 = arith.constant 0 : index
    %107 = vector.load %arg13[%c2_60, %c0_61, %c0_62] : memref<3x128x128xbf16, #tpu.memory_space<vmem>>, vector<1x128x128xbf16>
    %108 = vector.shape_cast %107 : vector<1x128x128xbf16> to vector<128x128xbf16>
    %cst_63 = arith.constant dense<0.000000e+00> : vector<32x128xf32>
    %109 = tpu.matmul %100, %108, %cst_63 {dimension_numbers = #tpu.dot_dimension_numbers<[1], [0], [0], [1], [0, 0, 1, 1], [], []>} : vector<32x128xbf16>, vector<128x128xbf16>, vector<32x128xf32> -> vector<32x128xf32>
    %c1_i32_64 = arith.constant 1 : i32
    %110 = tpu.dynamic_rotate %103 by %c1_i32_64 dim 0 : vector<32x128xf32>, i32 -> vector<32x128xf32>
    %111 = vector.broadcast %2 : vector<32x1xf32> to vector<32x128xf32>
    %112 = arith.mulf %110, %111 : vector<32x128xf32>
    %113 = arith.addf %112, %106 : vector<32x128xf32>
    %c31_i32_65 = arith.constant 31 : i32
    %114 = tpu.dynamic_rotate %109 by %c31_i32_65 dim 0 : vector<32x128xf32>, i32 -> vector<32x128xf32>
    %115 = vector.broadcast %3 : vector<32x1xf32> to vector<32x128xf32>
    %116 = arith.mulf %114, %115 : vector<32x128xf32>
    %117 = arith.addf %113, %116 : vector<32x128xf32>
    %c0_66 = arith.constant 0 : index
    %c0_67 = arith.constant 0 : index
    %118 = vector.load %arg14[%c0_66, %c0_67] : memref<1x128xf32, #tpu.memory_space<vmem>>, vector<1x128xf32>
    %119 = vector.broadcast %118 : vector<1x128xf32> to vector<32x128xf32>
    %120 = arith.addf %117, %119 : vector<32x128xf32>
    %121 = vector.shape_cast %120 : vector<32x128xf32> to vector<2x16x128xf32>
    %cst_68 = arith.constant dense<0.000000e+00> : vector<2x128xf32>
    %122 = vector.multi_reduction <add>, %121, %cst_68 [1] : vector<2x16x128xf32> to vector<2x128xf32>
    %123 = arith.mulf %121, %121 : vector<2x16x128xf32>
    %cst_69 = arith.constant dense<0.000000e+00> : vector<2x128xf32>
    %124 = vector.multi_reduction <add>, %123, %cst_69 [1] : vector<2x16x128xf32> to vector<2x128xf32>
    %c0_70 = arith.constant 0 : index
    %c0_71 = arith.constant 0 : index
    %125 = vector.load %arg5[%c0_70, %c0_71] : memref<128x8xf32, #tpu.memory_space<vmem>>, vector<128x8xf32>
    %cst_72 = arith.constant dense<0.000000e+00> : vector<2x8xf32>
    %126 = tpu.matmul %122, %125, %cst_72 {dimension_numbers = #tpu.dot_dimension_numbers<[1], [0], [0], [1], [0, 0, 1, 1], [], []>} : vector<2x128xf32>, vector<128x8xf32>, vector<2x8xf32> -> vector<2x8xf32>
    %cst_73 = arith.constant 6.400000e+01 : f32
    %127 = vector.broadcast %cst_73 : f32 to vector<2x8xf32>
    %128 = arith.divf %126, %127 : vector<2x8xf32>
    %c0_74 = arith.constant 0 : index
    %c0_75 = arith.constant 0 : index
    %129 = vector.load %arg5[%c0_74, %c0_75] : memref<128x8xf32, #tpu.memory_space<vmem>>, vector<128x8xf32>
    %cst_76 = arith.constant dense<0.000000e+00> : vector<2x8xf32>
    %130 = tpu.matmul %124, %129, %cst_76 {dimension_numbers = #tpu.dot_dimension_numbers<[1], [0], [0], [1], [0, 0, 1, 1], [], []>} : vector<2x128xf32>, vector<128x8xf32>, vector<2x8xf32> -> vector<2x8xf32>
    %cst_77 = arith.constant 6.400000e+01 : f32
    %131 = vector.broadcast %cst_77 : f32 to vector<2x8xf32>
    %132 = arith.divf %130, %131 : vector<2x8xf32>
    %133 = arith.mulf %128, %128 : vector<2x8xf32>
    %134 = arith.subf %132, %133 : vector<2x8xf32>
    %cst_78 = arith.constant 9.99999974E-6 : f32
    %135 = vector.broadcast %cst_78 : f32 to vector<2x8xf32>
    %136 = arith.addf %134, %135 : vector<2x8xf32>
    %137 = math.rsqrt %136 : vector<2x8xf32>
    %c0_79 = arith.constant 0 : index
    %c0_80 = arith.constant 0 : index
    %138 = vector.load %arg6[%c0_79, %c0_80] : memref<8x128xf32, #tpu.memory_space<vmem>>, vector<8x128xf32>
    %cst_81 = arith.constant dense<0.000000e+00> : vector<2x128xf32>
    %139 = tpu.matmul %128, %138, %cst_81 {dimension_numbers = #tpu.dot_dimension_numbers<[1], [0], [0], [1], [0, 0, 1, 1], [], []>} : vector<2x8xf32>, vector<8x128xf32>, vector<2x128xf32> -> vector<2x128xf32>
    %c0_82 = arith.constant 0 : index
    %c0_83 = arith.constant 0 : index
    %140 = vector.load %arg6[%c0_82, %c0_83] : memref<8x128xf32, #tpu.memory_space<vmem>>, vector<8x128xf32>
    %cst_84 = arith.constant dense<0.000000e+00> : vector<2x128xf32>
    %141 = tpu.matmul %137, %140, %cst_84 {dimension_numbers = #tpu.dot_dimension_numbers<[1], [0], [0], [1], [0, 0, 1, 1], [], []>} : vector<2x8xf32>, vector<8x128xf32>, vector<2x128xf32> -> vector<2x128xf32>
    %142 = vector.shape_cast %139 : vector<2x128xf32> to vector<2x1x128xf32>
    %143 = vector.broadcast %142 : vector<2x1x128xf32> to vector<2x16x128xf32>
    %144 = arith.subf %121, %143 : vector<2x16x128xf32>
    %145 = vector.shape_cast %141 : vector<2x128xf32> to vector<2x1x128xf32>
    %146 = vector.broadcast %145 : vector<2x1x128xf32> to vector<2x16x128xf32>
    %147 = arith.mulf %144, %146 : vector<2x16x128xf32>
    %c0_85 = arith.constant 0 : index
    %c0_86 = arith.constant 0 : index
    %148 = vector.load %arg15[%c0_85, %c0_86] : memref<1x128xf32, #tpu.memory_space<vmem>>, vector<1x128xf32>
    %149 = vector.shape_cast %148 : vector<1x128xf32> to vector<1x1x128xf32>
    %150 = vector.broadcast %149 : vector<1x1x128xf32> to vector<2x16x128xf32>
    %151 = arith.mulf %147, %150 : vector<2x16x128xf32>
    %c0_87 = arith.constant 0 : index
    %c0_88 = arith.constant 0 : index
    %152 = vector.load %arg16[%c0_87, %c0_88] : memref<1x128xf32, #tpu.memory_space<vmem>>, vector<1x128xf32>
    %153 = vector.shape_cast %152 : vector<1x128xf32> to vector<1x1x128xf32>
    %154 = vector.broadcast %153 : vector<1x1x128xf32> to vector<2x16x128xf32>
    %155 = arith.addf %151, %154 : vector<2x16x128xf32>
    %156 = vector.shape_cast %155 : vector<2x16x128xf32> to vector<32x128xf32>
    %cst_89 = arith.constant 3.000000e+01 : f32
    %157 = vector.broadcast %cst_89 : f32 to vector<32x128xf32>
    %158 = arith.minimumf %156, %157 : vector<32x128xf32>
    %159 = math.exp %158 : vector<32x128xf32>
    %cst_90 = arith.constant 2.000000e+00 : f32
    %160 = vector.broadcast %cst_90 : f32 to vector<32x128xf32>
    %161 = arith.addf %159, %160 : vector<32x128xf32>
    %162 = arith.mulf %159, %161 : vector<32x128xf32>
    %163 = arith.mulf %156, %162 : vector<32x128xf32>
    %cst_91 = arith.constant 2.000000e+00 : f32
    %164 = vector.broadcast %cst_91 : f32 to vector<32x128xf32>
    %165 = arith.addf %162, %164 : vector<32x128xf32>
    %166 = tpu.reciprocal %165 {approx = true} : vector<32x128xf32> -> vector<32x128xf32>
    %167 = arith.mulf %163, %166 : vector<32x128xf32>
    %c0_92 = arith.constant 0 : index
    %c0_93 = arith.constant 0 : index
    %168 = vector.load %arg17[%c0_92, %c0_93] : memref<16x128xbf16, #tpu.memory_space<vmem>>, vector<16x128xbf16>
    %cst_94 = arith.constant dense<0.000000e+00> : vector<32x128xf32>
    %169 = tpu.matmul %1, %168, %cst_94 {dimension_numbers = #tpu.dot_dimension_numbers<[1], [0], [0], [1], [0, 0, 1, 1], [], []>} : vector<32x16xbf16>, vector<16x128xbf16>, vector<32x128xf32> -> vector<32x128xf32>
    %c0_95 = arith.constant 0 : index
    %c0_96 = arith.constant 0 : index
    %170 = vector.load %arg18[%c0_95, %c0_96] : memref<1x128xf32, #tpu.memory_space<vmem>>, vector<1x128xf32>
    %171 = vector.broadcast %170 : vector<1x128xf32> to vector<32x128xf32>
    %172 = arith.addf %169, %171 : vector<32x128xf32>
    %173 = arith.addf %167, %172 : vector<32x128xf32>
    %174 = vector.shape_cast %173 : vector<32x128xf32> to vector<2x16x128xf32>
    %c0_97 = arith.constant 0 : index
    %c0_98 = arith.constant 0 : index
    %c0_99 = arith.constant 0 : index
    %175 = vector.load %arg19[%c0_97, %c0_98, %c0_99] : memref<2x16x128xf32, #tpu.memory_space<vmem>>, vector<2x16x128xf32>
    tpu.vector_store %arg19[%c0_97, %c0_98, %c0_99], %174 {strides = array<i32>} : memref<2x16x128xf32, #tpu.memory_space<vmem>>, vector<2x16x128xf32>,
    return
  }
  func.func @transform_0(%arg0: i32) -> (i32, i32, i32) {
    %c0_i32 = arith.constant 0 : i32
    %c0_i32_0 = arith.constant 0 : i32
    %c0_i32_1 = arith.constant 0 : i32
    return %arg0, %c0_i32, %c0_i32_0 : i32, i32, i32
  }
  func.func @transform_1(%arg0: i32) -> (i32, i32, i32) {
    %c0_i32 = arith.constant 0 : i32
    %c0_i32_0 = arith.constant 0 : i32
    %c0_i32_1 = arith.constant 0 : i32
    return %arg0, %c0_i32, %c0_i32_0 : i32, i32, i32
  }
  func.func @transform_2(%arg0: i32) -> (i32, i32) {
    %c0_i32 = arith.constant 0 : i32
    %c0_i32_0 = arith.constant 0 : i32
    %c0_i32_1 = arith.constant 0 : i32
    return %c0_i32, %c0_i32_0 : i32, i32
  }
  func.func @transform_3(%arg0: i32) -> (i32, i32) {
    %c0_i32 = arith.constant 0 : i32
    %c0_i32_0 = arith.constant 0 : i32
    %c0_i32_1 = arith.constant 0 : i32
    return %c0_i32, %c0_i32_0 : i32, i32
  }
  func.func @transform_4(%arg0: i32) -> (i32, i32) {
    %c0_i32 = arith.constant 0 : i32
    %c0_i32_0 = arith.constant 0 : i32
    %c0_i32_1 = arith.constant 0 : i32
    return %c0_i32, %c0_i32_0 : i32, i32
  }
  func.func @transform_5(%arg0: i32) -> (i32, i32) {
    %c0_i32 = arith.constant 0 : i32
    %c0_i32_0 = arith.constant 0 : i32
    %c0_i32_1 = arith.constant 0 : i32
    return %c0_i32, %c0_i32_0 : i32, i32
  }
  func.func @transform_6(%arg0: i32) -> (i32, i32, i32) {
    %c0_i32 = arith.constant 0 : i32
    %c0_i32_0 = arith.constant 0 : i32
    %c0_i32_1 = arith.constant 0 : i32
    %c0_i32_2 = arith.constant 0 : i32
    return %c0_i32, %c0_i32_0, %c0_i32_1 : i32, i32, i32
  }
  func.func @transform_7(%arg0: i32) -> (i32, i32) {
    %c0_i32 = arith.constant 0 : i32
    %c0_i32_0 = arith.constant 0 : i32
    %c0_i32_1 = arith.constant 0 : i32
    return %c0_i32, %c0_i32_0 : i32, i32
  }
  func.func @transform_8(%arg0: i32) -> (i32, i32) {
    %c0_i32 = arith.constant 0 : i32
    %c0_i32_0 = arith.constant 0 : i32
    %c0_i32_1 = arith.constant 0 : i32
    return %c0_i32, %c0_i32_0 : i32, i32
  }
  func.func @transform_9(%arg0: i32) -> (i32, i32) {
    %c0_i32 = arith.constant 0 : i32
    %c0_i32_0 = arith.constant 0 : i32
    %c0_i32_1 = arith.constant 0 : i32
    return %c0_i32, %c0_i32_0 : i32, i32
  }
  func.func @transform_10(%arg0: i32) -> (i32, i32) {
    %c0_i32 = arith.constant 0 : i32
    %c0_i32_0 = arith.constant 0 : i32
    %c0_i32_1 = arith.constant 0 : i32
    return %c0_i32, %c0_i32_0 : i32, i32
  }
  func.func @transform_11(%arg0: i32) -> (i32, i32) {
    %c0_i32 = arith.constant 0 : i32
    %c0_i32_0 = arith.constant 0 : i32
    %c0_i32_1 = arith.constant 0 : i32
    return %c0_i32, %c0_i32_0 : i32, i32
  }
  func.func @transform_12(%arg0: i32) -> (i32, i32, i32) {
    %c0_i32 = arith.constant 0 : i32
    %c0_i32_0 = arith.constant 0 : i32
    %c0_i32_1 = arith.constant 0 : i32
    %c0_i32_2 = arith.constant 0 : i32
    return %c0_i32, %c0_i32_0, %c0_i32_1 : i32, i32, i32
  }
  func.func @transform_13(%arg0: i32) -> (i32, i32) {
    %c0_i32 = arith.constant 0 : i32
    %c0_i32_0 = arith.constant 0 : i32
    %c0_i32_1 = arith.constant 0 : i32
    return %c0_i32, %c0_i32_0 : i32, i32
  }
  func.func @transform_14(%arg0: i32) -> (i32, i32) {
    %c0_i32 = arith.constant 0 : i32
    %c0_i32_0 = arith.constant 0 : i32
    %c0_i32_1 = arith.constant 0 : i32
    return %c0_i32, %c0_i32_0 : i32, i32
  }
  func.func @transform_15(%arg0: i32) -> (i32, i32) {
    %c0_i32 = arith.constant 0 : i32
    %c0_i32_0 = arith.constant 0 : i32
    %c0_i32_1 = arith.constant 0 : i32
    return %c0_i32, %c0_i32_0 : i32, i32
  }
  func.func @transform_16(%arg0: i32) -> (i32, i32) {
    %c0_i32 = arith.constant 0 : i32
    %c0_i32_0 = arith.constant 0 : i32
    %c0_i32_1 = arith.constant 0 : i32
    return %c0_i32, %c0_i32_0 : i32, i32
  }
  func.func @transform_17(%arg0: i32) -> (i32, i32) {
    %c0_i32 = arith.constant 0 : i32
    %c0_i32_0 = arith.constant 0 : i32
    %c0_i32_1 = arith.constant 0 : i32
    return %c0_i32, %c0_i32_0 : i32, i32
  }
  func.func @transform_18(%arg0: i32) -> (i32, i32, i32) {
    %c0_i32 = arith.constant 0 : i32
    %c0_i32_0 = arith.constant 0 : i32
    %c0_i32_1 = arith.constant 0 : i32
    return %arg0, %c0_i32, %c0_i32_0 : i32, i32, i32
  }
}

</mosaic_0001>

<bundles_post_ra>
// kernel: conditional_residual_block_1d.1
= control target key start
LH: loop header
LB: loop body
LE: loop exit
PB: predicated region body
PF: predicated region fallthrough
CT: control target
= control target key end

     0   :  { %s5545_s0 = inlined_call_operand.hbm [shape: bf16[4,16,16], index: 0, kind: input, shape index: {}]   ;;  %s5546_s1 = inlined_call_operand.hbm [shape: f32[4,1,32], index: 1, kind: input, shape index: {}]   ;;  %s5547_s2 = inlined_call_operand.hbm [shape: f32[32,1], index: 2, kind: input, shape index: {}]   ;;  %s5548_s3 = inlined_call_operand.hbm [shape: f32[32,1], index: 3, kind: input, shape index: {}]   ;;  %s5549_s4 = inlined_call_operand.hbm [shape: f32[128,8], index: 4, kind: input, shape index: {}]   ;;  %s5550_s5 = inlined_call_operand.hbm [shape: f32[8,128], index: 5, kind: input, shape index: {}]   ;;  %s5551_s6 = inlined_call_operand.hbm [shape: bf16[3,16,128], index: 6, kind: input, shape index: {}]   ;;  %s5552_s7 = inlined_call_operand.hbm [shape: f32[1,128], index: 7, kind: input, shape index: {}]   ;;  %s5553_s8 = inlined_call_operand.hbm [shape: f32[1,128], index: 8, kind: input, shape index: {}]   ;;  %s5554_s9 = inlined_call_operand.hbm [shape: f32[1,128], index: 9, kind: input, shape index: {}]   ;;  %s5555_s10 = inlined_call_operand.hbm [shape: bf16[32,256], index: 10, kind: input, shape index: {}]   ;;  %s5556_s11 = inlined_call_operand.hbm [shape: f32[1,256], index: 11, kind: input, shape index: {}]   ;;  %s5557_s12 = inlined_call_operand.hbm [shape: bf16[3,128,128], index: 12, kind: input, shape index: {}]   ;;  %s5558_s13 = inlined_call_operand.hbm [shape: f32[1,128], index: 13, kind: input, shape index: {}]   ;;  %s5559_s14 = inlined_call_operand.hbm [shape: f32[1,128], index: 14, kind: input, shape index: {}]   ;;  %s5560_s15 = inlined_call_operand.hbm [shape: f32[1,128], index: 15, kind: input, shape index: {}]   ;;  %s5561_s16 = inlined_call_operand.hbm [shape: bf16[16,128], index: 16, kind: input, shape index: {}]   ;;  %s5562_s17 = inlined_call_operand.hbm [shape: f32[1,128], index: 17, kind: input, shape index: {}]   ;;  %s5563_s18 = inlined_call_operand.hbm [shape: f32[4,16,128], index: 18, kind: output, shape index: {}]  }
   0x1   :  { %5588 = sst [smem:[#allocation50_spill]] %s5545_s0 }
   0x2   :  { %5589 = sst [smem:[#allocation51_spill]] %s5546_s1 }
   0x3   :  { %5590 = sst [smem:[#allocation52_spill]] %s5547_s2 }
   0x4   :  { %5591 = sst [smem:[#allocation53_spill]] %s5548_s3 }
   0x5   :  { %5592 = sst [smem:[#allocation54_spill]] %s5549_s4 }
   0x6   :  { %5593 = sst [smem:[#allocation55_spill]] %s5550_s5 }
   0x7   :  { %5594 = sst [smem:[#allocation56_spill]] %s5551_s6 }
   0x8   :  { %5595 = sst [smem:[#allocation57_spill]] %s5552_s7 }
   0x9   :  { %5596 = sst [smem:[#allocation58_spill]] %s5553_s8 }
   0xa   :  { %5597 = sst [smem:[#allocation59_spill]] %s5554_s9 }
   0xb   :  { %5598 = sst [smem:[#allocation60_spill]] %s5555_s10 }
   0xc   :  { %5599 = sst [smem:[#allocation61_spill]] %s5556_s11 }
   0xd   :  { %5600 = sst [smem:[#allocation62_spill]] %s5562_s17 }
   0xe   :  { %5601 = sst [smem:[#allocation63_spill]] %s5563_s18 }
   0xf   :  { %23 = vsyncpa [#allocation3], 0 }
  0x10   :  { %25 = vsyncpa [#allocation3 + $0x1], 0 }
  0x11   :  { %26 = vsyncpa [#allocation6], 0 }
  0x12   :  { %28 = vsyncpa [#allocation6 + $0x1], 0 }
  0x13   :  { %29 = vsyncpa [#allocation9], 0 }
  0x14   :  { %30 = vsyncpa [#allocation12], 0 }
  0x15   :  { %31 = vsyncpa [#allocation15], 0 }
  0x16   :  { %32 = vsyncpa [#allocation18], 0 }
  0x17   :  { %33 = vsyncpa [#allocation21], 0 }
  0x18   :  { %34 = vsyncpa [#allocation24], 0 }
  0x19   :  { %35 = vsyncpa [#allocation27], 0 }
  0x1a   :  { %36 = vsyncpa [#allocation30], 0 }
  0x1b   :  { %37 = vsyncpa [#allocation4], 0 }
  0x1c   :  { %39 = vsyncpa [#allocation4 + $0x1], 0  ;;  %s4616_s27 = smov 0   ;;  %s4618_s28 = smov 0  }
  0x1d   :  { %s4620_s29 = smov 0   ;;  %s4622_s30 = smov 0  }
  0x1e LB: > { %5602 = sst [smem:[#allocation44_spill]] %s4475_s27  ;;  %s4489_s0 = smov [#allocation7]   ;;  %s4487_s30 = sphi %s4622_s30, %s5671_s30   ;;  %s4483_s29 = sphi %s4620_s29, %s5670_s29   ;;  %s4479_s28 = sphi %s4618_s28, %s5669_s28   ;;  %s4475_s27 = sphi %s4616_s27, %s5668_s27  }
  0x1f   : > { %5603 = sst [smem:[#allocation45_spill]] %s4479_s28  ;;  %s476_s19 = sshll.u32 %s4489_s0, 4  ;;  %s4642_s19 = int_to_ptr.vmem [resolvable:$true] %s476_s19 }
  0x20   : > { %5604 = sst [smem:[#allocation46_spill]] %s4483_s29  ;;  %s4637_s1 = sadd.s32 4294967295, %s4487_s30  }
  0x21   : > { %5605 = sst [smem:[#allocation47_spill]] %s4487_s30  ;;  %p2996_p0 = scmp.ge.s32.totalorder %s4487_s30, 1 }
  0x22   : > { %5606 = sst [smem:[#allocation48_spill]] %s4637_s1  ;;  %p5579_p1 = scmp.eq.s32.totalorder %s4637_s1, 0 }
  0x23   : > { %p464_p2 = scmp.lt.s32.totalorder %s4487_s30, 3  ;;  %s4490_s21 = smov [#allocation8]  }
  0x24   : > { %s489_s22 = sshll.u32 %s4490_s21, 4  ;;  %s4491_s23 = smov [#allocation11]   ;;  %s4657_s22 = int_to_ptr.vmem [resolvable:$true] %s489_s22 }
  0x25   : > { %p4644_p3 = pnand %p2996_p0, %p464_p2  ;;  %s516_s24 = sshll.u32 %s4491_s23, 4  ;;  %s4659_s24 = int_to_ptr.vmem [resolvable:$true] %s516_s24 }
  0x26   : > { %s5610_s0 = sld [smem:[#allocation52_spill]] }
  0x27   : > { %s5607_s20 = scalar_select %p4644_p3, 1, 0 }
  0x28   : > { %p3634_p5 = pneg %p4644_p3 }
  0x29   : > { %5608 = sst [smem:[#allocation49_spill]] %s5607_s20 }
  0x2a   : > { %p4653_p6 = pnand %p3634_p5, %p5579_p1 }
  0x2c   : > { %s3873_s18 = scalar_lea.hbm %s5610_s0, 512  ;;  %p4669_p8 = pneg %p4653_p6 }
  0x2d   : > { %p3874_p7 = scmp.ne.s32.totalorder %s5610_s0, %s3873_s18  ;;  %p3880_p11 = scmp.lt.u32.totalorder %s3873_s18, %s5610_s0 }
  0x2f   : > { %p3876_p9 = pnand %p4669_p8, %p3874_p7 }
  0x31   : > { %p3877_p10 = pneg %p3876_p9 }
  0x33   : > { %p3882_p12 = pnand %p3880_p11, %p3877_p10 }
  0x35   : > { %3885 = shalt.err (!%p3882_p12)
}
  0x36   : > { %s3886_s27 = scalar_lea.vmem %s4642_s19, 512  ;;  %p3894_p5 = scmp.lt.s32.totalorder %s4642_s19, %s4642_s19 }
  0x37   : > { %p3887_p13 = scmp.ne.s32.totalorder %s4642_s19, %s3886_s27  ;;  %p3895_p4 = scmp.lt.s32.totalorder %s3886_s27, %s3886_s27 }
  0x39   : > { %p3889_p0 = pnand %p3887_p13, %p4669_p8  ;;  %p3896_p7 = por %p3895_p4, %p3894_p5 }
  0x3b   : > { %p3890_p2 = pneg %p3889_p0 }
  0x3d   : > { %p3897_p9 = pnand %p3896_p7, %p3890_p2 }
  0x3f   : > { %3900 = shalt.err (!%p3897_p9)
}
  0x40   : > { %s5577_s20 = smov 128   ;;  %s5581_s18 = smov 8  }
  0x41   : > { %3637 = dma.hbm_to_vmem [thread:$0]  (!%p4653_p6), %s5610_s0, 512, %s4642_s19, [#allocation6], %s5577_s20, %s5577_s20, %s5581_s18  }
  0x42   : > { %s5612_s3 = sld [smem:[#allocation53_spill]] }
  0x48   : > { %s3901_s27 = scalar_lea.hbm %s5612_s3, 512 }
  0x49   : > { %p3902_p4 = scmp.ne.s32.totalorder %s5612_s3, %s3901_s27  ;;  %p3908_p12 = scmp.lt.u32.totalorder %s3901_s27, %s5612_s3 }
  0x4b   : > { %p3904_p10 = pnand %p3902_p4, %p4669_p8 }
  0x4d   : > { %p3905_p11 = pneg %p3904_p10 }
  0x4f   : > { %p3910_p13 = pnand %p3908_p12, %p3905_p11 }
  0x51   : > { %3913 = shalt.err (!%p3910_p13)
}
  0x52   : > { %s3914_s19 = scalar_lea.vmem %s4657_s22, 512  ;;  %p3922_p7 = scmp.lt.s32.totalorder %s4657_s22, %s4657_s22 }
  0x53   : > { %p3915_p0 = scmp.ne.s32.totalorder %s4657_s22, %s3914_s19  ;;  %p3923_p9 = scmp.lt.s32.totalorder %s3914_s19, %s3914_s19 }
  0x55   : > { %p3917_p2 = pnand %p3915_p0, %p4669_p8  ;;  %p3924_p4 = por %p3923_p9, %p3922_p7 }
  0x57   : > { %p3918_p5 = pneg %p3917_p2 }
  0x59   : > { %p3925_p10 = pnand %p3924_p4, %p3918_p5 }
  0x5b   : > { %3928 = shalt.err (!%p3925_p10)
}
  0x5c   : > { %3640 = dma.hbm_to_vmem [thread:$0]  (!%p4653_p6), %s5612_s3, 512, %s4657_s22, [#allocation9], %s5577_s20, %s5577_s20, %s5581_s18  }
  0x5d   : > { %s5613_s5 = sld [smem:[#allocation55_spill]] }
  0x63   : > { %s3929_s1 = scalar_lea.hbm %s5613_s5, 128 }
  0x64   : > { %p3930_p11 = scmp.ne.s32.totalorder %s5613_s5, %s3929_s1  ;;  %p3936_p0 = scmp.lt.u32.totalorder %s3929_s1, %s5613_s5 }
  0x66   : > { %p3932_p12 = pnand %p3930_p11, %p4669_p8 }
  0x68   : > { %p3933_p13 = pneg %p3932_p12 }
  0x6a   : > { %p3938_p2 = pnand %p3936_p0, %p3933_p13 }
  0x6c   : > { %3941 = shalt.err (!%p3938_p2)
}
  0x6d   : > { %s3942_s22 = scalar_lea.vmem %s4659_s24, 128  ;;  %p3950_p4 = scmp.lt.s32.totalorder %s4659_s24, %s4659_s24 }
  0x6e   : > { %p3943_p5 = scmp.ne.s32.totalorder %s4659_s24, %s3942_s22  ;;  %p3951_p10 = scmp.lt.s32.totalorder %s3942_s22, %s3942_s22 }
  0x70   : > { %p3945_p7 = pnand %p3943_p5, %p4669_p8  ;;  %p3952_p11 = por %p3951_p10, %p3950_p4 }
  0x72   : > { %p3946_p9 = pneg %p3945_p7 }
  0x74   : > { %p3953_p12 = pnand %p3952_p11, %p3946_p9 }
  0x76   : > { %3956 = shalt.err (!%p3953_p12)
}
  0x77   : > { %3646 = dma.hbm_to_vmem [thread:$0]  (!%p4653_p6), %s5613_s5, 128, %s4659_s24, [#allocation12]  }
  0x78   : > { %s4494_s28 = smov [#allocation14]   ;;  %s4495_s30 = smov [#allocation17]  }
  0x79   : > { %s540_s29 = sshll.u32 %s4494_s28, 4  ;;  %s562_s1 = sshll.u32 %s4495_s30, 4  ;;  %s541_s29 = int_to_ptr.vmem [resolvable:$true] %s540_s29  ;;  %s563_s1 = int_to_ptr.vmem [resolvable:$true] %s562_s1 }
  0x7a   : > { %s5614_s7 = sld [smem:[#allocation57_spill]] }
  0x80   : > { %s3957_s23 = scalar_lea.hbm %s5614_s7, 16 }
  0x81   : > { %p3958_p13 = scmp.ne.s32.totalorder %s5614_s7, %s3957_s23  ;;  %p3964_p5 = scmp.lt.u32.totalorder %s3957_s23, %s5614_s7 }
  0x83   : > { %p3960_p0 = pnand %p3958_p13, %p4669_p8 }
  0x85   : > { %p3961_p2 = pneg %p3960_p0 }
  0x87   : > { %p3966_p7 = pnand %p3964_p5, %p3961_p2 }
  0x89   : > { %3969 = shalt.err (!%p3966_p7)
}
  0x8a   : > { %s3970_s24 = scalar_lea.vmem %s541_s29, 16  ;;  %s3977_s17 = scalar_lea.vmem %s541_s29, 32 }
  0x8b   : > { %p3971_p9 = scmp.ne.s32.totalorder %s541_s29, %s3970_s24  ;;  %p3978_p11 = scmp.lt.s32.totalorder %s541_s29, %s541_s29 }
  0x8c   : > { %p3979_p12 = scmp.lt.s32.totalorder %s3977_s17, %s3970_s24 }
  0x8d   : > { %p3973_p4 = pnand %p3971_p9, %p4669_p8 }
  0x8e   : > { %p3980_p1 = por %p3979_p12, %p3978_p11 }
  0x8f   : > { %p3974_p10 = pneg %p3973_p4 }
  0x91   : > { %p3981_p3 = pnand %p3980_p1, %p3974_p10 }
  0x93   : > { %3984 = shalt.err (!%p3981_p3)
}
  0x94   : > { %3652 = dma.hbm_to_vmem [thread:$0]  (!%p4653_p6), %s5614_s7, 16, %s541_s29, [#allocation15]  }
  0x95   : > { %s5615_s9 = sld [smem:[#allocation59_spill]] }
  0x9b   : > { %s3985_s26 = scalar_lea.hbm %s5615_s9, 16 }
  0x9c   : > { %p3986_p13 = scmp.ne.s32.totalorder %s5615_s9, %s3985_s26  ;;  %p3992_p3 = scmp.lt.u32.totalorder %s3985_s26, %s5615_s9 }
  0x9e   : > { %p3988_p0 = pnand %p3986_p13, %p4669_p8 }
  0xa0   : > { %p3989_p1 = pneg %p3988_p0 }
  0xa2   : > { %p3994_p2 = pnand %p3992_p3, %p3989_p1 }
  0xa4   : > { %3997 = shalt.err (!%p3994_p2)
}
  0xa5   : > { %s3998_s24 = scalar_lea.vmem %s563_s1, 16  ;;  %s4005_s29 = scalar_lea.vmem %s563_s1, 32 }
  0xa6   : > { %p3999_p5 = scmp.ne.s32.totalorder %s563_s1, %s3998_s24  ;;  %p4006_p4 = scmp.lt.s32.totalorder %s563_s1, %s563_s1 }
  0xa7   : > { %p4007_p10 = scmp.lt.s32.totalorder %s4005_s29, %s3998_s24 }
  0xa8   : > { %p4001_p7 = pnand %p3999_p5, %p4669_p8 }
  0xa9   : > { %p4008_p11 = por %p4007_p10, %p4006_p4 }
  0xaa   : > { %p4002_p9 = pneg %p4001_p7 }
  0xac   : > { %p4009_p12 = pnand %p4008_p11, %p4002_p9 }
  0xae   : > { %4012 = shalt.err (!%p4009_p12)
}
  0xaf   : > { %3658 = dma.hbm_to_vmem [thread:$0]  (!%p4653_p6), %s5615_s9, 16, %s563_s1, [#allocation18]  }
  0xb0   : > { %s4496_s30 = smov [#allocation20]   ;;  %s4497_s25 = smov [#allocation23]  }
  0xb1   : > { %s586_s20 = sshll.u32 %s4496_s30, 4  ;;  %s610_s26 = sshll.u32 %s4497_s25, 4  ;;  %s587_s20 = int_to_ptr.vmem [resolvable:$true] %s586_s20  ;;  %s611_s26 = int_to_ptr.vmem [resolvable:$true] %s610_s26 }
  0xb2   : > { %s5616_s11 = sld [smem:[#allocation61_spill]] }
  0xb8   : > { %s4013_s22 = scalar_lea.hbm %s5616_s11, 32 }
  0xb9   : > { %p4014_p13 = scmp.ne.s32.totalorder %s5616_s11, %s4013_s22  ;;  %p4020_p3 = scmp.lt.u32.totalorder %s4013_s22, %s5616_s11 }
  0xbb   : > { %p4016_p0 = pnand %p4014_p13, %p4669_p8 }
  0xbd   : > { %p4017_p1 = pneg %p4016_p0 }
  0xbf   : > { %p4022_p2 = pnand %p4020_p3, %p4017_p1 }
  0xc1   : > { %4025 = shalt.err (!%p4022_p2)
}
  0xc2   : > { %s4026_s1 = scalar_lea.vmem %s587_s20, 32  ;;  %p4034_p4 = scmp.lt.s32.totalorder %s587_s20, %s587_s20 }
  0xc3   : > { %p4027_p5 = scmp.ne.s32.totalorder %s587_s20, %s4026_s1  ;;  %p4035_p10 = scmp.lt.s32.totalorder %s4026_s1, %s4026_s1 }
  0xc5   : > { %p4029_p7 = pnand %p4027_p5, %p4669_p8  ;;  %p4036_p11 = por %p4035_p10, %p4034_p4 }
  0xc7   : > { %p4030_p9 = pneg %p4029_p7 }
  0xc9   : > { %p4037_p12 = pnand %p4036_p11, %p4030_p9 }
  0xcb   : > { %4040 = shalt.err (!%p4037_p12)
}
  0xcc   : > { %3664 = dma.hbm_to_vmem [thread:$0]  (!%p4653_p6), %s5616_s11, 32, %s587_s20, [#allocation21]  }
  0xcd   : > { %s4041_s27 = scalar_lea.hbm %s5558_s13, 16 }
  0xce   : > { %p4042_p13 = scmp.ne.s32.totalorder %s5558_s13, %s4041_s27  ;;  %p4048_p3 = scmp.lt.u32.totalorder %s4041_s27, %s5558_s13 }
  0xd0   : > { %p4044_p0 = pnand %p4042_p13, %p4669_p8 }
  0xd2   : > { %p4045_p1 = pneg %p4044_p0 }
  0xd4   : > { %p4050_p2 = pnand %p4048_p3, %p4045_p1 }
  0xd6   : > { %4053 = shalt.err (!%p4050_p2)
}
  0xd7   : > { %s4054_s17 = scalar_lea.vmem %s611_s26, 16  ;;  %s4061_s20 = scalar_lea.vmem %s611_s26, 32 }
  0xd8   : > { %p4055_p5 = scmp.ne.s32.totalorder %s611_s26, %s4054_s17  ;;  %p4062_p4 = scmp.lt.s32.totalorder %s611_s26, %s611_s26 }
  0xd9   : > { %p4063_p10 = scmp.lt.s32.totalorder %s4061_s20, %s4054_s17 }
  0xda   : > { %p4057_p7 = pnand %p4055_p5, %p4669_p8 }
  0xdb   : > { %p4064_p11 = por %p4063_p10, %p4062_p4 }
  0xdc   : > { %p4058_p9 = pneg %p4057_p7 }
  0xde   : > { %p4065_p12 = pnand %p4064_p11, %p4058_p9 }
  0xe0   : > { %4068 = shalt.err (!%p4065_p12)
}
  0xe1   : > { %3670 = dma.hbm_to_vmem [thread:$0]  (!%p4653_p6), %s5558_s13, 16, %s611_s26, [#allocation24]  }
  0xe2   : > { %s4498_s30 = smov [#allocation26]   ;;  %s4499_s23 = smov [#allocation10]  }
  0xe3   : > { %s632_s25 = sshll.u32 %s4498_s30, 4  ;;  %s502_s27 = sshll.u32 %s4499_s23, 4  ;;  %s633_s25 = int_to_ptr.vmem [resolvable:$true] %s632_s25  ;;  %s503_s27 = int_to_ptr.vmem [resolvable:$true] %s502_s27 }
  0xe4   : > { %s4069_s24 = scalar_lea.hbm %s5560_s15, 16 }
  0xe5   : > { %p4070_p13 = scmp.ne.s32.totalorder %s5560_s15, %s4069_s24  ;;  %p4076_p3 = scmp.lt.u32.totalorder %s4069_s24, %s5560_s15 }
  0xe7   : > { %p4072_p0 = pnand %p4070_p13, %p4669_p8 }
  0xe9   : > { %p4073_p1 = pneg %p4072_p0 }
  0xeb   : > { %p4078_p2 = pnand %p4076_p3, %p4073_p1 }
  0xed   : > { %4081 = shalt.err (!%p4078_p2)
}
  0xee   : > { %s4082_s26 = scalar_lea.vmem %s633_s25, 16  ;;  %s4089_s28 = scalar_lea.vmem %s633_s25, 32 }
  0xef   : > { %p4083_p5 = scmp.ne.s32.totalorder %s633_s25, %s4082_s26  ;;  %p4090_p4 = scmp.lt.s32.totalorder %s633_s25, %s633_s25 }
  0xf0   : > { %p4091_p10 = scmp.lt.s32.totalorder %s4089_s28, %s4082_s26 }
  0xf1   : > { %p4085_p7 = pnand %p4083_p5, %p4669_p8 }
  0xf2   : > { %p4092_p11 = por %p4091_p10, %p4090_p4 }
  0xf3   : > { %p4086_p9 = pneg %p4085_p7 }
  0xf5   : > { %p4093_p12 = pnand %p4092_p11, %p4086_p9 }
  0xf7   : > { %4096 = shalt.err (!%p4093_p12)
}
  0xf8   : > { %3676 = dma.hbm_to_vmem [thread:$0]  (!%p4653_p6), %s5560_s15, 16, %s633_s25, [#allocation27]  }
  0xf9   : > { %s5617_s4 = sld [smem:[#allocation54_spill]] }
  0xff   : > { %s4097_s24 = scalar_lea.hbm %s5617_s4, 2048 }
 0x100   : > { %p4098_p13 = scmp.ne.s32.totalorder %s5617_s4, %s4097_s24  ;;  %p4104_p3 = scmp.lt.u32.totalorder %s4097_s24, %s5617_s4 }
 0x102   : > { %p4100_p0 = pnand %p4098_p13, %p4669_p8 }
 0x104   : > { %p4101_p1 = pneg %p4100_p0 }
 0x106   : > { %p4106_p2 = pnand %p4104_p3, %p4101_p1 }
 0x108   : > { %4109 = shalt.err (!%p4106_p2)
}
 0x109   : > { %s4110_s26 = scalar_lea.vmem %s503_s27, 2048  ;;  %p4118_p4 = scmp.lt.s32.totalorder %s503_s27, %s503_s27 }
 0x10a   : > { %p4111_p5 = scmp.ne.s32.totalorder %s503_s27, %s4110_s26  ;;  %p4119_p10 = scmp.lt.s32.totalorder %s4110_s26, %s4110_s26 }
 0x10c   : > { %p4113_p7 = pnand %p4111_p5, %p4669_p8  ;;  %p4120_p11 = por %p4119_p10, %p4118_p4 }
 0x10e   : > { %p4114_p9 = pneg %p4113_p7 }
 0x110   : > { %p4121_p12 = pnand %p4120_p11, %p4114_p9 }
 0x112   : > { %4124 = shalt.err (!%p4121_p12)
}
 0x113   : > { %s5618_s25 = smov 128   ;;  %s4500_s23 = smov [#allocation13]  }
 0x114   : > { %3643 = dma.hbm_to_vmem [thread:$0]  (!%p4653_p6), %s5617_s4, 2048, %s503_s27, [#allocation9], %s5618_s25, %s5618_s25, %s5581_s18  }
 0x115   : > { %s526_s22 = sshll.u32 %s4500_s23, 4  ;;  %s5619_s6 = sld [smem:[#allocation56_spill]]  ;;  %s527_s22 = int_to_ptr.vmem [resolvable:$true] %s526_s22 }
 0x11b   : > { %s4125_s29 = scalar_lea.hbm %s5619_s6, 384 }
 0x11c   : > { %p4126_p13 = scmp.ne.s32.totalorder %s5619_s6, %s4125_s29  ;;  %p4132_p3 = scmp.lt.u32.totalorder %s4125_s29, %s5619_s6 }
 0x11e   : > { %p4128_p0 = pnand %p4126_p13, %p4669_p8 }
 0x120   : > { %p4129_p1 = pneg %p4128_p0 }
 0x122   : > { %p4134_p2 = pnand %p4132_p3, %p4129_p1 }
 0x124   : > { %4137 = shalt.err (!%p4134_p2)
}
 0x125   : > { %s4138_s27 = scalar_lea.vmem %s527_s22, 384  ;;  %p4146_p4 = scmp.lt.s32.totalorder %s527_s22, %s527_s22 }
 0x126   : > { %p4139_p5 = scmp.ne.s32.totalorder %s527_s22, %s4138_s27  ;;  %p4147_p10 = scmp.lt.s32.totalorder %s4138_s27, %s4138_s27 }
 0x128   : > { %p4141_p7 = pnand %p4139_p5, %p4669_p8  ;;  %p4148_p11 = por %p4147_p10, %p4146_p4 }
 0x12a   : > { %p4142_p9 = pneg %p4141_p7 }
 0x12c   : > { %p4149_p12 = pnand %p4148_p11, %p4142_p9 }
 0x12e   : > { %4152 = shalt.err (!%p4149_p12)
}
 0x12f   : > { %s5583_s28 = smov 64   ;;  %s5585_s30 = smov 4  }
 0x130   : > { %3649 = dma.hbm_to_vmem [thread:$0]  (!%p4653_p6), %s5619_s6, 384, %s527_s22, [#allocation12], %s5583_s28, %s5583_s28, %s5585_s30  }
 0x131   : > { %s4503_s24 = smov [#allocation16]   ;;  %s4504_s17 = smov [#allocation19]  }
 0x132   : > { %s551_s29 = sshll.u32 %s4503_s24, 4  ;;  %s572_s20 = sshll.u32 %s4504_s17, 4  ;;  %s552_s29 = int_to_ptr.vmem [resolvable:$true] %s551_s29  ;;  %s4874_s20 = int_to_ptr.vmem [resolvable:$true] %s572_s20 }
 0x133   : > { %s5620_s8 = sld [smem:[#allocation58_spill]] }
 0x139   : > { %s4153_s27 = scalar_lea.hbm %s5620_s8, 16 }
 0x13a   : > { %p4154_p13 = scmp.ne.s32.totalorder %s5620_s8, %s4153_s27  ;;  %p4160_p3 = scmp.lt.u32.totalorder %s4153_s27, %s5620_s8 }
 0x13c   : > { %p4156_p0 = pnand %p4154_p13, %p4669_p8 }
 0x13e   : > { %p4157_p1 = pneg %p4156_p0 }
 0x140   : > { %p4162_p2 = pnand %p4160_p3, %p4157_p1 }
 0x142   : > { %4165 = shalt.err (!%p4162_p2)
}
 0x143   : > { %s4166_s19 = scalar_lea.vmem %s552_s29, 16  ;;  %s4173_s24 = scalar_lea.vmem %s552_s29, 32 }
 0x144   : > { %p4167_p5 = scmp.ne.s32.totalorder %s552_s29, %s4166_s19  ;;  %p4174_p4 = scmp.lt.s32.totalorder %s552_s29, %s552_s29 }
 0x145   : > { %p4175_p10 = scmp.lt.s32.totalorder %s4173_s24, %s4166_s19 }
 0x146   : > { %p4169_p7 = pnand %p4167_p5, %p4669_p8 }
 0x147   : > { %p4176_p11 = por %p4175_p10, %p4174_p4 }
 0x148   : > { %p4170_p9 = pneg %p4169_p7 }
 0x14a   : > { %p4177_p12 = pnand %p4176_p11, %p4170_p9 }
 0x14c   : > { %4180 = shalt.err (!%p4177_p12)
}
 0x14d   : > { %3655 = dma.hbm_to_vmem [thread:$0]  (!%p4653_p6), %s5620_s8, 16, %s552_s29, [#allocation15]  }
 0x14e   : > { %s5621_s10 = sld [smem:[#allocation60_spill]] }
 0x154   : > { %s4181_s26 = scalar_lea.hbm %s5621_s10, 512 }
 0x155   : > { %p4182_p13 = scmp.ne.s32.totalorder %s5621_s10, %s4181_s26  ;;  %p4188_p3 = scmp.lt.u32.totalorder %s4181_s26, %s5621_s10 }
 0x157   : > { %p4184_p0 = pnand %p4182_p13, %p4669_p8 }
 0x159   : > { %p4185_p1 = pneg %p4184_p0 }
 0x15b   : > { %p4190_p2 = pnand %p4188_p3, %p4185_p1 }
 0x15d   : > { %4193 = shalt.err (!%p4190_p2)
}
 0x15e   : > { %s4194_s29 = scalar_lea.vmem %s4874_s20, 512  ;;  %p4202_p4 = scmp.lt.s32.totalorder %s4874_s20, %s4874_s20 }
 0x15f   : > { %p4195_p5 = scmp.ne.s32.totalorder %s4874_s20, %s4194_s29  ;;  %p4203_p10 = scmp.lt.s32.totalorder %s4194_s29, %s4194_s29 }
 0x161   : > { %p4197_p7 = pnand %p4195_p5, %p4669_p8  ;;  %p4204_p11 = por %p4203_p10, %p4202_p4 }
 0x163   : > { %p4198_p9 = pneg %p4197_p7 }
 0x165   : > { %p4205_p12 = pnand %p4204_p11, %p4198_p9 }
 0x167   : > { %4208 = shalt.err (!%p4205_p12)
}
 0x168   : > { %s5622_s24 = smov 8   ;;  %s4505_s17 = smov [#allocation22]  }
 0x169   : > { %3661 = dma.hbm_to_vmem [thread:$0]  (!%p4653_p6), %s5621_s10, 512, %s4874_s20, [#allocation18], %s5618_s25, %s5618_s25, %s5622_s24  }
 0x16a   : > { %s596_s1 = sshll.u32 %s4505_s17, 4  ;;  %s4506_s26 = smov [#allocation25]   ;;  %s597_s1 = int_to_ptr.vmem [resolvable:$true] %s596_s1 }
 0x16b   : > { %s621_s27 = sshll.u32 %s4506_s26, 4  ;;  %s4209_s19 = scalar_lea.hbm %s5557_s12, 3072  ;;  %s4920_s27 = int_to_ptr.vmem [resolvable:$true] %s621_s27 }
 0x16c   : > { %p4210_p13 = scmp.ne.s32.totalorder %s5557_s12, %s4209_s19  ;;  %p4216_p3 = scmp.lt.u32.totalorder %s4209_s19, %s5557_s12 }
 0x16e   : > { %p4212_p0 = pnand %p4210_p13, %p4669_p8 }
 0x170   : > { %p4213_p1 = pneg %p4212_p0 }
 0x172   : > { %p4218_p2 = pnand %p4216_p3, %p4213_p1 }
 0x174   : > { %4221 = shalt.err (!%p4218_p2)
}
 0x175   : > { %s4222_s20 = scalar_lea.vmem %s597_s1, 3072  ;;  %p4230_p4 = scmp.lt.s32.totalorder %s597_s1, %s597_s1 }
 0x176   : > { %p4223_p5 = scmp.ne.s32.totalorder %s597_s1, %s4222_s20  ;;  %p4231_p10 = scmp.lt.s32.totalorder %s4222_s20, %s4222_s20 }
 0x178   : > { %p4225_p7 = pnand %p4223_p5, %p4669_p8  ;;  %p4232_p11 = por %p4231_p10, %p4230_p4 }
 0x17a   : > { %p4226_p9 = pneg %p4225_p7 }
 0x17c   : > { %p4233_p12 = pnand %p4232_p11, %p4226_p9 }
 0x17e   : > { %4236 = shalt.err (!%p4233_p12)
}
 0x17f   : > { %s5623_s28 = smov 64   ;;  %s4237_s23 = scalar_lea.hbm %s5559_s14, 16 }
 0x180   : > { %3667 = dma.hbm_to_vmem [thread:$0]  (!%p4653_p6), %s5557_s12, 3072, %s597_s1, [#allocation21], %s5623_s28, %s5623_s28, %s5585_s30  }
 0x181   : > { %p4238_p13 = scmp.ne.s32.totalorder %s5559_s14, %s4237_s23  ;;  %p4244_p3 = scmp.lt.u32.totalorder %s4237_s23, %s5559_s14 }
 0x183   : > { %p4240_p0 = pnand %p4238_p13, %p4669_p8 }
 0x185   : > { %p4241_p1 = pneg %p4240_p0 }
 0x187   : > { %p4246_p2 = pnand %p4244_p3, %p4241_p1 }
 0x189   : > { %4249 = shalt.err (!%p4246_p2)
}
 0x18a   : > { %s4250_s1 = scalar_lea.vmem %s4920_s27, 16  ;;  %s4257_s25 = scalar_lea.vmem %s4920_s27, 32 }
 0x18b   : > { %p4251_p5 = scmp.ne.s32.totalorder %s4920_s27, %s4250_s1  ;;  %p4258_p4 = scmp.lt.s32.totalorder %s4920_s27, %s4920_s27 }
 0x18c   : > { %p4259_p10 = scmp.lt.s32.totalorder %s4257_s25, %s4250_s1 }
 0x18d   : > { %p4253_p7 = pnand %p4251_p5, %p4669_p8 }
 0x18e   : > { %p4260_p11 = por %p4259_p10, %p4258_p4 }
 0x18f   : > { %p4254_p9 = pneg %p4253_p7 }
 0x191   : > { %p4261_p12 = pnand %p4260_p11, %p4254_p9 }
 0x193   : > { %4264 = shalt.err (!%p4261_p12)
}
 0x194   : > { %3673 = dma.hbm_to_vmem [thread:$0]  (!%p4653_p6), %s5559_s14, 16, %s4920_s27, [#allocation24]  }
 0x195   : > { %s4507_s18 = smov [#allocation28]   ;;  %s4508_s26 = smov [#allocation29]  }
 0x196   : > { %s642_s17 = sshll.u32 %s4507_s18, 4  ;;  %s656_s23 = sshll.u32 %s4508_s26, 4  ;;  %s643_s17 = int_to_ptr.vmem [resolvable:$true] %s642_s17  ;;  %s4967_s23 = int_to_ptr.vmem [resolvable:$true] %s656_s23 }
 0x197   : > { %s4265_s29 = scalar_lea.hbm %s5561_s16, 128 }
 0x198   : > { %p4266_p13 = scmp.ne.s32.totalorder %s5561_s16, %s4265_s29  ;;  %p4272_p3 = scmp.lt.u32.totalorder %s4265_s29, %s5561_s16 }
 0x19a   : > { %p4268_p0 = pnand %p4266_p13, %p4669_p8 }
 0x19c   : > { %p4269_p1 = pneg %p4268_p0 }
 0x19e   : > { %p4274_p2 = pnand %p4272_p3, %p4269_p1 }
 0x1a0   : > { %4277 = shalt.err (!%p4274_p2)
}
 0x1a1   : > { %s4278_s20 = scalar_lea.vmem %s643_s17, 128  ;;  %p4286_p4 = scmp.lt.s32.totalorder %s643_s17, %s643_s17 }
 0x1a2   : > { %p4279_p5 = scmp.ne.s32.totalorder %s643_s17, %s4278_s20  ;;  %p4287_p10 = scmp.lt.s32.totalorder %s4278_s20, %s4278_s20 }
 0x1a4   : > { %p4281_p7 = pnand %p4279_p5, %p4669_p8  ;;  %p4288_p11 = por %p4287_p10, %p4286_p4 }
 0x1a6   : > { %p4282_p9 = pneg %p4281_p7 }
 0x1a8   : > { %p4289_p12 = pnand %p4288_p11, %p4282_p9 }
 0x1aa   : > { %4292 = shalt.err (!%p4289_p12)
}
 0x1ab   : > { %3679 = dma.hbm_to_vmem [thread:$0]  (!%p4653_p6), %s5561_s16, 128, %s643_s17, [#allocation27], %s5623_s28, %s5623_s28, %s5585_s30  }
 0x1ac   : > { %s5624_s19 = sld [smem:[#allocation62_spill]] }
 0x1b2   : > { %s4293_s29 = scalar_lea.hbm %s5624_s19, 16 }
 0x1b3   : > { %p4294_p13 = scmp.ne.s32.totalorder %s5624_s19, %s4293_s29  ;;  %p4300_p3 = scmp.lt.u32.totalorder %s4293_s29, %s5624_s19 }
 0x1b5   : > { %p4296_p0 = pnand %p4294_p13, %p4669_p8 }
 0x1b7   : > { %p4297_p1 = pneg %p4296_p0 }
 0x1b9   : > { %p4302_p2 = pnand %p4300_p3, %p4297_p1 }
 0x1bb   : > { %4305 = shalt.err (!%p4302_p2)
}
 0x1bc   : > { %s4306_s17 = scalar_lea.vmem %s4967_s23, 16  ;;  %s4313_s20 = scalar_lea.vmem %s4967_s23, 32 }
 0x1bd   : > { %p4307_p5 = scmp.ne.s32.totalorder %s4967_s23, %s4306_s17  ;;  %p4314_p4 = scmp.lt.s32.totalorder %s4967_s23, %s4967_s23 }
 0x1be   : > { %p4315_p10 = scmp.lt.s32.totalorder %s4313_s20, %s4306_s17 }
 0x1bf   : > { %p4309_p7 = pnand %p4307_p5, %p4669_p8 }
 0x1c0   : > { %p4316_p11 = por %p4315_p10, %p4314_p4 }
 0x1c1   : > { %p4310_p9 = pneg %p4309_p7 }
 0x1c3   : > { %p4317_p12 = pnand %p4316_p11, %p4310_p9 }
 0x1c5   : > { %4320 = shalt.err (!%p4317_p12)
}
 0x1c6   : > { %s5625_s26 = sld [smem:[#allocation47_spill]]  ;;  %s5626_s22 = sld [smem:[#allocation46_spill]] }
 0x1c7   : > { %s5627_s21 = sld [smem:[#allocation45_spill]]  ;;  %s5628_s29 = sld [smem:[#allocation44_spill]] }
 0x1c8   : > { %s5629_s0 = sld [smem:[#allocation48_spill]] }
 0x1c9   : > { %3682 = dma.hbm_to_vmem [thread:$0]  (!%p4653_p6), %s5624_s19, 16, %s4967_s23, [#allocation30]  }
 0x1cc   : > { %s2995_s2 = sadd.s32 4294967294, %s5625_s26   ;;  %s5016_s1 = sadd.s32 1, %s5625_s26  }
 0x1cd   : > { %s49_s25 = ssub.s32 %s5625_s26, %s5016_s1  ;;  %s52_s27 = sadd.s32 1, %s5626_s22 }
 0x1ce   : > { %p50_p8 = scmp.eq.s32.totalorder %s49_s25, 0  ;;  %p59_p13 = scmp.ne.s32.totalorder %s5626_s22, %s5627_s21 }
 0x1cf   : > { %p60_p0 = scmp.eq.s32.totalorder %s5625_s26, 0  ;;  %p65_p1 = scmp.ne.s32.totalorder %s5627_s21, %s5628_s29 }
 0x1d0   : > { %s5027_s17 = scalar_select %p50_p8, %s5626_s22, %s52_s27  }
 0x1d1   : > { %p5029_p3 = por %p60_p0, %p59_p13  ;;  %p5631_p2 = scmp.eq.s32.totalorder %s5629_s0, 0 }
 0x1d2   : > { %p451_p5 = scmp.eq.s32.totalorder %s5629_s0, 1  ;;  %p457_p7 = scmp.eq.s32.totalorder %s2995_s2, 1 }
 0x1d3   : > { %p5035_p6 = por %p5631_p2, %p65_p1  ;;  %p3710_p9 = scmp.lt.s32.totalorder %s5625_s26, 2 }
 0x1d4   : > { %s5042_s24 = sand.u32 1, %s5626_s22   ;;  %p5044_p4 = por %p451_p5, %p59_p13 }
 0x1d5   : > { %p5048_p10 = por %p457_p7, %p65_p1  ;;  %s3014_s29 = sshll.u32 %s5042_s24, 4 }
 0x1d6   : > { %s5633_s18 = scalar_select %p5044_p4, 1, 0 }
 0x1d7   : > { %s5634_s21 = scalar_select %p5048_p10, 1, 0 }
 0x1d8   : > { %s3102_s25 = sshll.u32 %s5625_s26, 8  ;;  %s5635_s0 = sld [smem:[#allocation50_spill]] }
 0x1d9   : > { %s671_s22 = scalar_lea.vmem [#allocation2], %s3014_s29  ;;  %p5063_p11 = pnand %p3710_p9, %p5029_p3 }
 0x1da   : > { %s679_s3 = sshll.u32 %s671_s22, 4  ;;  %s3018_s6 = sshll.u32 %s5042_s24, 1  ;;  %s5059_s3 = int_to_ptr.vmem [resolvable:$true] %s679_s3 }
 0x1db   : > { %s668_s30 = scalar_lea.sflag [#allocation3], %s5042_s24  ;;  %p4323_p8 = pneg %p5063_p11 }
 0x1de   : > { %s5057_s2 = scalar_lea.hbm %s5635_s0, %s3102_s25  ;;  %s4326_s20 = scalar_lea.hbm %s5635_s0, 512 }
 0x1df   : > { %s4321_s25 = scalar_lea.hbm %s5057_s2, 256  ;;  %p4327_p1 = scmp.lt.u32.totalorder %s5057_s2, %s5635_s0 }
 0x1e0   : > { %p4322_p12 = scmp.ne.s32.totalorder %s5057_s2, %s4321_s25  ;;  %p4328_p3 = scmp.lt.u32.totalorder %s4326_s20, %s4321_s25 }
 0x1e1   : > { %p4330_p5 = scmp.lt.u32.totalorder %s4321_s25, %s5057_s2 }
 0x1e2   : > { %p4324_p13 = pnand %p4323_p8, %p4322_p12  ;;  %p4329_p2 = por %p4328_p3, %p4327_p1 }
 0x1e4   : > { %p4325_p0 = pneg %p4324_p13  ;;  %p4331_p7 = por %p4330_p5, %p4329_p2 }
 0x1e6   : > { %p4332_p9 = pnand %p4331_p7, %p4325_p0 }
 0x1e8   : > { %4335 = shalt.err (!%p4332_p9)
}
 0x1e9   : > { %s4336_s5 = scalar_lea.vmem %s5059_s3, 256  ;;  %s4509_s29 = smov [#allocation2]  }
 0x1ea   : > { %p4337_p12 = scmp.ne.s32.totalorder %s5059_s3, %s4336_s5  ;;  %s4341_s27 = sshll.u32 %s4509_s29, 4  ;;  %s4342_s27 = int_to_ptr.vmem [resolvable:$false] %s4341_s27 }
 0x1eb   : > { %s4343_s7 = scalar_lea.vmem %s4342_s27, 512  ;;  %p4344_p4 = scmp.lt.s32.totalorder %s5059_s3, %s4342_s27 }
 0x1ec   : > { %p4339_p13 = pnand %p4337_p12, %p4323_p8  ;;  %p4345_p1 = scmp.lt.s32.totalorder %s4343_s7, %s4336_s5 }
 0x1ee   : > { %p4340_p10 = pneg %p4339_p13  ;;  %p4346_p3 = por %p4345_p1, %p4344_p4 }
 0x1f0   : > { %p4347_p2 = pnand %p4346_p3, %p4340_p10 }
 0x1f2   : > { %4350 = shalt.err (!%p4347_p2)
}
 0x1f3   : > { %s5637_s25 = smov 4   ;;  %s3103_s20 = sshll.u32 %s5625_s26, 5 }
 0x1f4   : > { %3686 = dma.hbm_to_vmem [thread:$0]  (!%p5063_p11), %s5057_s2, 256, %s5059_s3, %s668_s30, %s5623_s28, %s5623_s28, %s5637_s25  }
 0x1f5   : > { %s5638_s29 = sld [smem:[#allocation51_spill]]  ;;  %s693_s0 = scalar_lea.vmem [#allocation5], %s3018_s6 }
 0x1f6   : > { %s700_s8 = sshll.u32 %s693_s0, 4  ;;  %s5640_s9 = sand.u32 1, %s5625_s26   ;;  %s5108_s8 = int_to_ptr.vmem [resolvable:$true] %s700_s8 }
 0x1f7   : > { %s5112_s10 = scalar_lea.sflag [#allocation6], %s5640_s9 }
 0x1fb   : > { %s5639_s7 = smov %s5638_s29  ;;  %s5104_s27 = scalar_lea.hbm %s5638_s29, %s3103_s20 }
 0x1fc   : > { %s4351_s11 = scalar_lea.hbm %s5104_s27, 32  ;;  %s4356_s24 = scalar_lea.hbm %s5639_s7, 64 }
 0x1fd   : > { %p4352_p4 = scmp.ne.s32.totalorder %s5104_s27, %s4351_s11  ;;  %p4357_p5 = scmp.lt.u32.totalorder %s5104_s27, %s5639_s7 }
 0x1fe   : > { %p4358_p7 = scmp.lt.u32.totalorder %s4356_s24, %s4351_s11  ;;  %p4360_p12 = scmp.lt.u32.totalorder %s4351_s11, %s5104_s27 }
 0x1ff   : > { %p4354_p10 = pnand %p4352_p4, %p4323_p8 }
 0x200   : > { %p4359_p9 = por %p4358_p7, %p4357_p5 }
 0x201   : > { %p4355_p0 = pneg %p4354_p10 }
 0x202   : > { %p4361_p13 = por %p4360_p12, %p4359_p9 }
 0x204   : > { %p4362_p1 = pnand %p4361_p13, %p4355_p0 }
 0x206   : > { %4365 = shalt.err (!%p4362_p1)
}
 0x207   : > { %s4366_s6 = scalar_lea.vmem %s5108_s8, 32  ;;  %s4510_s9 = smov [#allocation5]  }
 0x208   : > { %p4367_p3 = scmp.ne.s32.totalorder %s5108_s8, %s4366_s6  ;;  %s4371_s26 = sshll.u32 %s4510_s9, 4  ;;  %s4372_s26 = int_to_ptr.vmem [resolvable:$false] %s4371_s26 }
 0x209   : > { %s4373_s0 = scalar_lea.vmem %s4372_s26, 64  ;;  %p4374_p10 = scmp.lt.s32.totalorder %s5108_s8, %s4372_s26 }
 0x20a   : > { %p4369_p2 = pnand %p4367_p3, %p4323_p8  ;;  %p4375_p5 = scmp.lt.s32.totalorder %s4373_s0, %s4366_s6 }
 0x20c   : > { %p4370_p4 = pneg %p4369_p2  ;;  %p4376_p7 = por %p4375_p5, %p4374_p10 }
 0x20e   : > { %p4377_p9 = pnand %p4376_p7, %p4370_p4 }
 0x210   : > { %4380 = shalt.err (!%p4377_p9)
}
 0x211   : > { %s4511_s11 = smov 16   ;;  %s4512_s25 = smov 1  }
 0x212   : > { %3689 = dma.hbm_to_vmem [thread:$0]  (!%p5063_p11), %s5104_s27, 32, %s5108_s8, %s5112_s10, %s4511_s11, %s4511_s11, %s4512_s25  }
 0x213   : > { %s5641_s20 = sld [smem:[#allocation49_spill]] }
 0x219   : > { %p5642_p8 = scmp.ne.s32.totalorder %s5641_s20, 0 }
 0x21a   : > { %s5643_s22 = sld [smem:[#allocation45_spill]] (!%p5642_p8) }
 0x21b   : > { %712 = sbr.rel (%p5642_p8) target bundleno = 2116 (0x844), region = 92 }
 0x220   : > { %s5141_s5 = sand.u32 (!%p5642_p8), 1, %s5643_s22  }
 0x221   : > { %s3022_s29 = sshll.u32 (!%p5642_p8), %s5141_s5, 4  ;;  %s715_s3 = scalar_lea.sflag (!%p5642_p8), [#allocation3], %s5141_s5 }
 0x222   : > { %s5145_s28 = scalar_lea.vmem [#allocation2], %s3022_s29 }
 0x223   : > { %4426 = dma.done.wait (%p5035_p6), %s715_s3, 256  }
 0x224   : > { %4428 = vsyncadd (%p5035_p6), %s715_s3, 4294967040  ;;  %s5644_s4 = sld [smem:[#allocation48_spill]]  ;;  %s3023_s10 = sshll.u32 %s5141_s5, 1 }
 0x225   : > { %s5153_s24 = scalar_lea.vmem [#allocation5], %s3023_s10 }
 0x22a   : > { %s723_s8 = sand.u32 1, %s5644_s4  }
 0x22b   : > { %s724_s27 = scalar_lea.sflag [#allocation6], %s723_s8 }
 0x22c   : > { %4430 = dma.done.wait (%p5035_p6), %s724_s27, 32  }
 0x22d   : > { %4432 = vsyncadd (%p5035_p6), %s724_s27, 4294967264  ;;  %p5645_p11 = scmp.eq.s32.totalorder %s5644_s4, 0 }
 0x22f   : > { %4434 = dma.done.wait (%p5645_p11), [#allocation6], 512   ;;  %p5646_p0 = pmov %p5645_p11 }
 0x231   : > { %4436 = vsyncadd (%p5646_p0), [#allocation6], 4294966784  ;;  %p5647_p12 = pmov %p5646_p0 }
 0x232   : > { %p5648_p13 = pmov %p5646_p0 }
 0x233   : > { %4438 = dma.done.wait (%p5647_p12), [#allocation9], 2560  }
 0x234   : > { %4440 = vsyncadd (%p5648_p13), [#allocation9], 4294964736  ;;  %p5649_p1 = pmov %p5646_p0 }
 0x235   : > { %p5650_p3 = pmov %p5646_p0 }
 0x236   : > { %4442 = dma.done.wait (%p5649_p1), [#allocation12], 512  }
 0x237   : > { %4444 = vsyncadd (%p5650_p3), [#allocation12], 4294966784  ;;  %p5651_p6 = pmov %p5646_p0 }
 0x238   : > { %p5652_p2 = pmov %p5646_p0 }
 0x239   : > { %4446 = dma.done.wait (%p5651_p6), [#allocation15], 32  }
 0x23a   : > { %4448 = vsyncadd (%p5652_p2), [#allocation15], 4294967264  ;;  %p5653_p4 = pmov %p5646_p0 }
 0x23b   : > { %p5654_p10 = pmov %p5646_p0 }
 0x23c   : > { %4450 = dma.done.wait (%p5653_p4), [#allocation18], 528  }
 0x23d   : > { %4452 = vsyncadd (%p5654_p10), [#allocation18], 4294966768  ;;  %p5655_p5 = pmov %p5646_p0 }
 0x23e   : > { %p5656_p7 = pmov %p5646_p0 }
 0x23f   : > { %4454 = dma.done.wait (%p5655_p5), [#allocation21], 3104  }
 0x240   : > { %4456 = vsyncadd (%p5656_p7), [#allocation21], 4294964192  ;;  %p5657_p9 = pmov %p5646_p0 }
 0x241   : > { %p5658_p8 = pmov %p5646_p0 }
 0x242   : > { %4458 = dma.done.wait (%p5657_p9), [#allocation24], 32  }
 0x243   : > { %4460 = vsyncadd (%p5658_p8), [#allocation24], 4294967264  ;;  %p5659_p11 = pmov %p5646_p0 }
 0x245   : > { %4462 = dma.done.wait (%p5659_p11), [#allocation27], 144  }
 0x246   : > { %4464 = vsyncadd (%p5646_p0), [#allocation27], 4294967152  ;;  %p5660_p12 = pmov %p5646_p0 }
 0x247   : > { %p5661_p13 = pmov %p5646_p0 }
 0x248   : > { %4466 = dma.done.wait (%p5660_p12), [#allocation30], 16  }
 0x249   : > { %4468 = vsyncadd (%p5661_p13), [#allocation30], 4294967280  ;;  %v4513_v0 = vmov 0   ;;  %v3791_v1 = vld [vmem:[#allocation13] sm:$0xff]   ;;  %vm883_vm0 = vcmask 130048   ;;  %v3794_v4 = vld [vmem:[#allocation13 + $0x10] sm:$0xff]   ;;  %v1059_v41 = vlaneseq }
 0x24a   : > { %3790 = vset.pattern.permute.xlu1 %v4513_v0  ;;  %3789 = vset.pattern.permute.xlu0 %v4513_v0  ;;  %v3792_v2 = vld [vmem:[%s5145_s28] sm:$0xff]   ;;  %v3793_v3 = vld [vmem:[%s5145_s28 + $0x8] sm:$0xff]   ;;  %v4514_v17 = vmov 0.0|0.0   ;;  %vm4515_vm1 = vmmov 0   ;;  %v4516_v35 = vmov 0.0   ;;  %vm1192_vm4 = vcmask 1041409  }
 0x24b   : > { %3224 = vmatprep.subr.bf16.mxu0 %v3791_v1  ;;  %3226 = vmatprep.mubr.msk.bf16.mxu0 %vm883_vm0, %v3792_v2  ;;  %v3795_v5 = vld [vmem:[#allocation13 + $0x8] sm:$0xff]   ;;  %v857_v7 = vld [vmem:[#allocation7] sm:$0xff]  ;;  %v860_v8 = vld [vmem:[#allocation7 + $0x18] sm:$0xff]  ;;  %v5263_v43 = vshrl.u32 %v1059_v41, 7  ;;  %vm1347_vm5 = vcmask 64512   ;;  %vm1691_vm6 = vcmask 261120  }
 0x24c   : > { %3225 = vmatpush3.bf16.msra.mxu0 %v3791_v1  ;;  %3232 = vmatprep.mubr.msk.bf16.mxu1 %vm883_vm0, %v3792_v2  ;;  %v859_v6 = vld [vmem:[#allocation7 + $0x10] sm:$0xff]  ;;  %v858_v9 = vld [vmem:[#allocation7 + $0x8] sm:$0xff]  ;;  %v861_v11 = vld [vmem:[#allocation8] sm:$0xff]  ;;  %s3040_s23 = sshll.u32 %s5141_s5, 5  ;;  %s3105_s6 = sshll.u32 %s5644_s4, 9 }
 0x24d   : > { %3236 = vmatprep.subr.bf16.mxu0 %v3794_v4  ;;  %3230 = vmatprep.subr.bf16.mxu1 %v3795_v5  ;;  %v862_v10 = vld [vmem:[#allocation8 + $0x8] sm:$0xff]  ;;  %v864_v12 = vld [vmem:[#allocation8 + $0x18] sm:$0xff]  ;;  %v863_v13 = vld [vmem:[#allocation8 + $0x10] sm:$0xff]  ;;  %vm1061_vm2 = vcmp.lt.s32.totalorder %v5263_v43, 1  ;;  %vm1098_vm3 = vcmp.lt.s32.totalorder %v5263_v43, 7  ;;  %s848_s2 = scalar_lea.vmem [#allocation31], %s3040_s23 }
 0x24e   : > { %3231 = vmatpush3.bf16.msra.mxu1 %v3795_v5  ;;  %1078 = vperm.xlu1 %3790, %v859_v6   ;;  %v1174_v14 = vld [vmem:[#allocation10] sm:$0xff]  ;;  %v1175_v15 = vld [vmem:[#allocation10 + $0x8] sm:$0xff]  ;;  %v1176_v18 = vld [vmem:[#allocation10 + $0x10] sm:$0xff]  ;;  %s2747_s30 = sshll.u32 %s848_s2, 4  ;;  %s5662_s0 = sld [smem:[#allocation63_spill]]  ;;  %s5495_s30 = int_to_ptr.vmem [resolvable:$true] %s2747_s30 }
 0x24f   : > { %3227 = vmatmul.mubr.msk.bf16.vlgmr.msra.gmra.mrb[0].mxu0 %vm883_vm0, %v3793_v3  ;;  %1068 = vperm.xlu0 %3789, %v857_v7   ;;  %v5205_v16 = vpack.c.bf16 %v1175_v15, %v1174_v14  ;;  %v1177_v19 = vld [vmem:[#allocation10 + $0x18] sm:$0xff]  ;;  %v1178_v21 = vld [vmem:[#allocation10 + $0x20] sm:$0xff]  ;;  %v1179_v22 = vld [vmem:[#allocation10 + $0x28] sm:$0xff]  ;;  %s2733_s25 = scalar_lea.sflag [#allocation4], %s5141_s5  ;;  %s4381_s20 = scalar_lea.vmem %s5495_s30, 512 }
 0x250   : > { %3237 = vmatpush3.bf16.msra.mxu0 %v3794_v4  ;;  %3238 = vmatprep.mubr.msk.bf16.mxu0 %vm883_vm0, %v3792_v2  ;;  %v5213_v20 = vpack.c.bf16 %v1177_v19, %v1176_v18  ;;  %v5219_v23 = vpack.c.bf16 %v1179_v22, %v1178_v21  ;;  %v1180_v24 = vld [vmem:[#allocation10 + $0x30] sm:$0xff]  ;;  %v1181_v25 = vld [vmem:[#allocation10 + $0x38] sm:$0xff]  ;;  %v1182_v27 = vld [vmem:[#allocation10 + $0x40] sm:$0xff]  ;;  %p4382_p1 = scmp.ne.s32.totalorder %s5495_s30, %s4381_s20  ;;  %p5663_p3 = scmp.ne.s32.totalorder %s5633_s18, 0 }
 0x251   : > { %3233 = vmatmul.mubr.msk.bf16.vlgmr.msra.gmra.mrb[0].mxu1 %vm883_vm0, %v3793_v3  ;;  %3468 = vmatprep.subr.bf16.mxu1 %v4514_v17  ;;  %v5225_v26 = vpack.c.bf16 %v1181_v25, %v1180_v24  ;;  %v1183_v28 = vld [vmem:[#allocation10 + $0x48] sm:$0xff]  ;;  %v1184_v30 = vld [vmem:[#allocation10 + $0x50] sm:$0xff]  ;;  %v1185_v31 = vld [vmem:[#allocation10 + $0x58] sm:$0xff]  ;;  %s4518_s22 = smov [#allocation31]  }
 0x252   : > { %1083 = vperm.xlu1 %3790, %v860_v8   ;;  %3492 = vmatprep.subr.bf16.mxu0 %v4514_v17  ;;  %v5231_v29 = vpack.c.bf16 %v1183_v28, %v1182_v27  ;;  %v5236_v32 = vpack.c.bf16 %v1185_v31, %v1184_v30  ;;  %v1186_v33 = vld [vmem:[#allocation10 + $0x60] sm:$0xff]  ;;  %v1187_v34 = vld [vmem:[#allocation10 + $0x68] sm:$0xff]  ;;  %v1188_v37 = vld [vmem:[#allocation10 + $0x70] sm:$0xff]  ;;  %p4383_p6 = pnand %p4382_p1, %p5663_p3  ;;  %s4385_s29 = sshll.u32 %s4518_s22, 4  ;;  %s4386_s29 = int_to_ptr.vmem [resolvable:$false] %s4385_s29 }
 0x253   : > { %1073 = vperm.xlu0 %3789, %v858_v9   ;;  %3470 = vmatpush3.bf16.msra.mxu1 %v5205_v16  ;;  %v5245_v36 = vpack.c.bf16 %v1187_v34, %v1186_v33  ;;  %v1189_v38 = vld [vmem:[#allocation10 + $0x78] sm:$0xff]  ;;  %v3052_v31 = vld [vmem:[#allocation14] ss:$0 sm:$0xff]  ;;  %s4387_s3 = scalar_lea.vmem %s4386_s29, 1024  ;;  %p4388_p4 = scmp.lt.s32.totalorder %s5495_s30, %s4386_s29 }
 0x254   : > { %3471 = vmatprep.subr.bf16.mxu1 %v4514_v17  ;;  %3274 = vmatprep.mubr.msk.f32.mxu1 %vm4515_vm1, %v4516_v35  ;;  %v5251_v39 = vpack.c.bf16 %v1189_v38, %v1188_v37  ;;  %s5501_s11 = scalar_lea.hbm %s5662_s0, %s3105_s6  ;;  %p4384_p2 = pneg %p4383_p6 }
 0x255   : > { %p4389_p10 = scmp.lt.s32.totalorder %s4387_s3, %s4381_s20 }
 0x256   : > { %1110 = vperm.xlu1 %3790, %v862_v10  }
 0x257   : > { %3239 = vmatmul.mubr.msk.bf16.vlgmr.msra.gmra.mrb[4].mxu0 %vm883_vm0, %v3793_v3  ;;  %1105 = vperm.xlu0 %3789, %v861_v11   ;;  %p4390_p5 = por %p4389_p10, %p4388_p4 }
 0x258   : > { %3494 = vmatpush3.bf16.msra.mxu0 %v5205_v16  ;;  %3473 = vmatpush3.bf16.msra.mxu1 %v5213_v20 }
 0x259   : > { %3495 = vmatprep.subr.bf16.mxu0 %v4514_v17  ;;  %3474 = vmatprep.subr.bf16.mxu1 %v4514_v17  ;;  %p4391_p7 = pnand %p4390_p5, %p4384_p2 }
 0x25a   : > { %1120 = vperm.xlu1 %3790, %v864_v12   ;;  %3309 = vmatprep.mubr.msk.f32.mxu0 %vm4515_vm1, %v4516_v35 }
 0x25b   : > { %1115 = vperm.xlu0 %3789, %v863_v13  }
 0x25c   : > { %3497 = vmatpush3.bf16.msra.mxu0 %v5213_v20  ;;  %3476 = vmatpush3.bf16.msra.mxu1 %v5219_v23 }
 0x25d   : > { %3498 = vmatprep.subr.bf16.mxu0 %v4514_v17  ;;  %3477 = vmatprep.subr.bf16.mxu1 %v4514_v17 }
 0x260   : > { %3500 = vmatpush3.bf16.msra.mxu0 %v5219_v23  ;;  %3479 = vmatpush3.bf16.msra.mxu1 %v5225_v26 }
 0x261   : > { %3501 = vmatprep.subr.bf16.mxu0 %v4514_v17  ;;  %3480 = vmatprep.subr.bf16.mxu1 %v4514_v17 }
 0x264   : > { %3503 = vmatpush3.bf16.msra.mxu0 %v5225_v26  ;;  %3482 = vmatpush3.bf16.msra.mxu1 %v5231_v29 }
 0x265   : > { %3504 = vmatprep.subr.bf16.mxu0 %v4514_v17  ;;  %3483 = vmatprep.subr.bf16.mxu1 %v4514_v17 }
 0x268   : > { %3506 = vmatpush3.bf16.msra.mxu0 %v5231_v29  ;;  %3485 = vmatpush3.bf16.msra.mxu1 %v5236_v32 }
 0x269   : > { %3507 = vmatprep.subr.bf16.mxu0 %v4514_v17  ;;  %3486 = vmatprep.subr.bf16.mxu1 %v4514_v17 }
 0x26c   : > { %3509 = vmatpush3.bf16.msra.mxu0 %v5236_v32  ;;  %3488 = vmatpush3.bf16.msra.mxu1 %v5245_v36 }
 0x26d   : > { %3510 = vmatprep.subr.bf16.mxu0 %v4514_v17  ;;  %3489 = vmatprep.subr.bf16.mxu1 %v4514_v17 }
 0x270   : > { %3512 = vmatpush3.bf16.msra.mxu0 %v5245_v36  ;;  %3491 = vmatpush3.bf16.msra.mxu1 %v5251_v39 }
 0x271   : > { %3513 = vmatprep.subr.bf16.mxu0 %v4514_v17  ;;  %3317 = vmatprep.subr.mxu1 %v4516_v35 }
 0x274   : > { %3515 = vmatpush3.bf16.msra.mxu0 %v5251_v39 }
 0x275   : > { %3312 = vmatprep.subr.mxu0 %v4516_v35 }
 0x2cd   : > { %v5259_v40 = vpop.permute.xlu1 %1078 }
 0x2ce   : > { %v5261_v42 = vpop.permute.xlu0 %1068 }
 0x2d1   : > { %v5265_v44 = vpop.permute.xlu1 %1083 }
 0x2d2   : > { %v5267_v46 = vpop.permute.xlu0 %1073 }
 0x2d5   : > { %v5274_v58 = vpop.permute.xlu1 %1110 }
 0x2d6   : > { %v5282_v1 = vpop.permute.xlu0 %1105 }
 0x2d9   : > { %v5287_v19 = vpop.permute.xlu1 %1120 }
 0x2da   : > { %v5289_v21 = vpop.permute.xlu0 %1115 }
 0x322   : > { %v3228_v45 = vpop.f32.mrb[0].mxu0 }
 0x323   : > { %v924_v47 = vpop.f32.mrb[1].mxu0  ;;  %v1057_v50 = vrot.slane %v3228_v45, 7 }
 0x324   : > { %v1055_v48 = vrot.slane %v924_v47, 7  ;;  %v3229_v49 = vpop.f32.mrb[2].mxu0  ;;  %v3234_v54 = vpop.f32.mrb[0].mxu1 }
 0x325   : > { %v1058_v51 = vrot.slane %v3229_v49, 7  ;;  %v927_v52 = vpop.f32.mrb[3].mxu0  ;;  %v982_v55 = vpop.f32.mrb[1].mxu1 }
 0x326   : > { %v1056_v53 = vrot.slane %v927_v52, 7  ;;  %v3235_v61 = vpop.f32.mrb[2].mxu1 }
 0x327   : > { %v1065_v56 = vsel %vm1061_vm2, %v1058_v51, %v1055_v48  ;;  %v1062_v57 = vsel %vm1061_vm2, %v1057_v50, %v1058_v51  ;;  %v985_v3 = vpop.f32.mrb[3].mxu1 }
 0x328   : > { %v1063_v59 = vsel %vm1061_vm2, %v1056_v53, %v1057_v50  ;;  %v1086_v60 = vmul.f32 %v5261_v42, %v1065_v56  ;;  %v1089_v62 = vmul.f32 %v5265_v44, %v1062_v57  ;;  %v1064_v63 = vsel %vm1061_vm2, %v1055_v48, %v1056_v53 }
 0x329   : > { %v1088_v2 = vmul.f32 %v5259_v40, %v1063_v59  ;;  %v1087_v4 = vmul.f32 %v5267_v46, %v1064_v63 }
 0x32a   : > { %v1090_v5 = vadd.f32 %v1086_v60, %v982_v55  ;;  %v1093_v6 = vadd.f32 %v3235_v61, %v1089_v62  ;;  %v3240_v7 = vpop.f32.mrb[4].mxu0 }
 0x32b   : > { %v1092_v8 = vadd.f32 %v3234_v54, %v1088_v2  ;;  %v1091_v9 = vadd.f32 %v1087_v4, %v985_v3  ;;  %v1040_v10 = vpop.f32.mrb[5].mxu0  ;;  %v1096_v13 = vrot.slane %v3240_v7, 1 }
 0x32c   : > { %v1094_v11 = vrot.slane %v1040_v10, 1  ;;  %v3241_v12 = vpop.f32.mrb[6].mxu0 }
 0x32d   : > { %v1097_v14 = vrot.slane %v3241_v12, 1  ;;  %v1043_v15 = vpop.f32.mrb[7].mxu0 }
 0x32e   : > { %v1095_v18 = vrot.slane %v1043_v15, 1 }
 0x32f   : > { %v1099_v22 = vsel %vm1098_vm3, %v1096_v13, %v1097_v14  ;;  %v1102_v24 = vsel %vm1098_vm3, %v1097_v14, %v1094_v11 }
 0x330   : > { %v1125_v25 = vmul.f32 %v5289_v21, %v1099_v22  ;;  %v1126_v27 = vmul.f32 %v5287_v19, %v1102_v24  ;;  %v1100_v28 = vsel %vm1098_vm3, %v1095_v18, %v1096_v13  ;;  %v1101_v30 = vsel %vm1098_vm3, %v1094_v11, %v1095_v18 }
 0x331   : > { %v1123_v33 = vmul.f32 %v5282_v1, %v1101_v30  ;;  %v1124_v34 = vmul.f32 %v5274_v58, %v1100_v28 }
 0x332   : > { %v1129_v37 = vadd.f32 %v1125_v25, %v1092_v8  ;;  %v1130_v38 = vadd.f32 %v1126_v27, %v1093_v6 }
 0x333   : > { %v1127_v41 = vadd.f32 %v1123_v33, %v1090_v5  ;;  %v1128_v45 = vadd.f32 %v1124_v34, %v1091_v9  ;;  %v5329_v33 = vld [vmem:[#allocation11] sm:$0xff]  ;;  %v3798_v34 = vld [vmem:[#allocation19 + $0x4] ss:$8 sps:$4 sm:$0xff]  }
 0x334   : > { %v5303_v47 = vadd.f32 %v3052_v31, %v1129_v37  ;;  %v5305_v48 = vadd.f32 %v3052_v31, %v1130_v38  ;;  %v1627_v37 = vld [vmem:[%s5153_s24 + $0x1] sm:$0x1] }
 0x335   : > { %v5307_v49 = vadd.f32 %v3052_v31, %v1127_v41  ;;  %v5309_v50 = vadd.f32 %v3052_v31, %v1128_v45  ;;  %v1629_v38 = vmin.f32 %v1627_v37, 30.0  ;;  %v1626_v41 = vld [vmem:[%s5153_s24] sm:$0x1] }
 0x336   : > { %v1158_v51 = vmul.f32 %v5303_v47, %v5303_v47  ;;  %v1159_v52 = vmul.f32 %v5305_v48, %v5305_v48  ;;  %v1149_v53 = vadd.f32 %v5305_v48, %v5303_v47  ;;  %v1628_v45 = vmin.f32 %v1626_v41, 30.0 }
 0x337   : > { %v1156_v54 = vmul.f32 %v5307_v49, %v5307_v49  ;;  %v1157_v55 = vmul.f32 %v5309_v50, %v5309_v50  ;;  %v1142_v56 = vadd.f32 %v5309_v50, %v5307_v49 }
 0x338   : > { %v1150_v57 = vrot.slane %v1149_v53, 4  ;;  %v1167_v59 = vadd.f32 %v1159_v52, %v1158_v51  ;;  %v1632_v51 = vmul.f32 1.442695, %v1629_v38  ;;  %v1630_v52 = vmul.f32 1.442695, %v1628_v45  ;;  %v3802_v38 = vld [vmem:[#allocation22] sm:$0xff]  }
 0x339   : > { %v1143_v60 = vrot.slane %v1142_v56, 4  ;;  %v1160_v61 = vadd.f32 %v1157_v55, %v1156_v54  ;;  %v3804_v45 = vld [vmem:[#allocation22 + $0x8] sm:$0xff]  }
 0x33a   : > { %v1151_v62 = vadd.f32 %v1150_v57, %v1149_v53  ;;  %v1168_v63 = vrot.slane %v1167_v59, 4  ;;  %3827 = vpow2.f32 %v1632_v51  ;;  %v3805_v51 = vld [vmem:[#allocation22 + $0x48] sm:$0xff]  }
 0x33b   : > { %v1144_v2 = vadd.f32 %v1143_v60, %v1142_v56  ;;  %v1161_v3 = vrot.slane %v1160_v61, 4  ;;  %3829 = vpow2.f32 %v1630_v52  ;;  %v3807_v52 = vld [vmem:[#allocation22 + $0x50] sm:$0xff]  }
 0x33c   : > { %v1152_v4 = vrot.slane %v1151_v62, 2  ;;  %v1169_v5 = vadd.f32 %v1168_v63, %v1167_v59 }
 0x33d   : > { %v1145_v6 = vrot.slane %v1144_v2, 2  ;;  %v1162_v7 = vadd.f32 %v1161_v3, %v1160_v61 }
 0x33e   : > { %v1153_v8 = vadd.f32 %v1152_v4, %v1151_v62  ;;  %v1170_v9 = vrot.slane %v1169_v5, 2 }
 0x33f   : > { %v1146_v10 = vadd.f32 %v1145_v6, %v1144_v2  ;;  %v1163_v11 = vrot.slane %v1162_v7, 2 }
 0x340   : > { %v1154_v12 = vrot.slane %v1153_v8, 1  ;;  %v1171_v13 = vadd.f32 %v1170_v9, %v1169_v5 }
 0x341   : > { %v1147_v14 = vrot.slane %v1146_v10, 1  ;;  %v1164_v15 = vadd.f32 %v1163_v11, %v1162_v7 }
 0x342   : > { %v1155_v18 = vadd.f32 %v1154_v12, %v1153_v8  ;;  %v1172_v22 = vrot.slane %v1171_v13, 1 }
 0x343   : > { %v1148_v24 = vadd.f32 %v1147_v14, %v1146_v10  ;;  %v1165_v25 = vrot.slane %v1164_v15, 1  ;;  %v3796_v10 = vld [vmem:[#allocation19] ss:$8 sps:$4 sm:$0xff]  }
 0x344   : > { %v1173_v27 = vadd.f32 %v1172_v22, %v1171_v13  ;;  %v3828_v53 = vpop.eup %3827 }
 0x345   : > { %v1193_v28 = vsel %vm1192_vm4, %v1155_v18, %v1148_v24  ;;  %v1166_v30 = vadd.f32 %v1165_v25, %v1164_v15  ;;  %v1635_v54 = vadd.f32 2.0, %v3828_v53  ;;  %v3830_v55 = vpop.eup %3829  ;;  %v3801_v15 = vld [vmem:[#allocation19 + $0x14] ss:$8 sps:$4 sm:$0xff]  }
 0x346   : > { %3275 = vmatmul.mubr.f32.vlgmr.msra.gmra.mrb[4].mxu1 %v1193_v28  ;;  %v1634_v56 = vadd.f32 2.0, %v3830_v55 }
 0x347   : > { %v1269_v31 = vsel %vm1192_vm4, %v1173_v27, %v1166_v30  ;;  %3319 = vmatprep.mubr.msk.f32.mxu1 %vm4515_vm1, %v4516_v35  ;;  %3318 = vmatpush3.msra.mxu1 %v5329_v33  ;;  %v1637_v57 = vmul.f32 %v3828_v53, %v1635_v54  ;;  %v3799_v27 = vld [vmem:[#allocation19 + $0x10] ss:$8 sps:$4 sm:$0xff]  }
 0x348   : > { %3310 = vmatmul.mubr.f32.vlgmr.msra.gmra.mrb[8].mxu0 %v1269_v31  ;;  %v1636_v59 = vmul.f32 %v3830_v55, %v1634_v56  ;;  %3322 = vmatprep.subr.bf16.mxu1 %v3802_v38  ;;  %v3808_v53 = vld [vmem:[#allocation22 + $0x18] sm:$0xff]   ;;  %v3810_v55 = vld [vmem:[#allocation22 + $0x20] sm:$0xff]  }
 0x349   : > { %3314 = vmatprep.mubr.msk.f32.mxu0 %vm4515_vm1, %v4516_v35  ;;  %3313 = vmatpush3.msra.mxu0 %v5329_v33  ;;  %v1641_v60 = vadd.f32 2.0, %v1637_v57  ;;  %v1639_v62 = vmul.f32 %v1637_v57, %v1627_v37  ;;  %v3809_v54 = vld [vmem:[#allocation22 + $0x58] sm:$0xff]   ;;  %v3811_v56 = vld [vmem:[#allocation22 + $0x60] sm:$0xff]   ;;  %v3812_v57 = vld [vmem:[#allocation22 + $0x28] sm:$0xff]  }
 0x34a   : > { %1695 = vmatprep.subr.bf16.mxu0 %v3798_v34  ;;  %v1640_v61 = vadd.f32 2.0, %v1636_v59  ;;  %v1638_v2 = vmul.f32 %v1636_v59, %v1626_v41  ;;  %v3803_v41 = vld [vmem:[#allocation22 + $0x40] sm:$0xff]   ;;  %v3813_v59 = vld [vmem:[#allocation22 + $0x68] sm:$0xff]  }
 0x34b   : > { %3831 = vrcp.f32 %v1641_v60  ;;  %v3814_v60 = vld [vmem:[#allocation22 + $0x30] sm:$0xff]  }
 0x34c   : > { %3833 = vrcp.f32 %v1640_v61  ;;  %v3815_v61 = vld [vmem:[#allocation22 + $0x70] sm:$0xff]  }
 0x355   : > { %v3832_v63 = vpop.eup %3831 }
 0x356   : > { %v1645_v3 = vmul.f32 %v3832_v63, %v1639_v62  ;;  %v3834_v4 = vpop.eup %3833  ;;  %v3816_v62 = vld [vmem:[#allocation22 + $0x38] sm:$0xff]  }
 0x357   : > { %v1644_v5 = vmul.f32 %v3834_v4, %v1638_v2  ;;  %v3817_v63 = vld [vmem:[#allocation22 + $0x78] sm:$0xff]   ;;  %v5339_v2 = vld [vmem:[#allocation22 + $0x80] sm:$0xff]  }
 0x358   : > { %v1647_v6 = vpack.c.bf16 %v1645_v3, %v1645_v3  ;;  %v4517_v3 = vmov 1966171168  }
 0x359   : > { %v1646_v7 = vpack.c.bf16 %v1644_v5, %v1644_v5  ;;  %v1496_v4 = vunpack.c.l.s4 %v4517_v3 }
 0x35a   : > { %v1667_v8 = vunpack.c.l.b16 %v1647_v6 }
 0x35b   : > { %v1666_v11 = vunpack.c.l.b16 %v1646_v7  ;;  %v1497_v5 = vunpack.c.0.s8 %v1496_v4 }
 0x35c   : > { %v1668_v12 = vrot.slane %v1667_v8, 7 }
 0x35d   : > { %v5344_v8 = vsub.s32 %v1497_v5, %v5263_v43 }
 0x35e   : > { %v1669_v28 = vsel %vm1192_vm4, %v1668_v12, %v1666_v11 }
 0x35f   : > { %v1670_v34 = vpack.c.b16 %v1669_v28, %v1669_v28 }
 0x419   : > { %v1261_v9 = vpop.f32.mrb[4].mxu1 }
 0x41a   : > { %v1266_v13 = vmul.f32 0.015625, %v1261_v9  ;;  %v3276_v14 = vpop.f32.mrb[5].mxu1 }
 0x41b   : > { %v1337_v18 = vpop.f32.mrb[8].mxu0 }
 0x41c   : > { %v1342_v22 = vmul.f32 %v1266_v13, %v1266_v13  ;;  %v1341_v24 = vmul.f32 0.015625, %v1337_v18  ;;  %v3311_v25 = vpop.f32.mrb[9].mxu0  ;;  %3315 = vmatmul.mubr.msk.f32.vlgmr.msra.gmra.mrb[10].mxu0 %vm1347_vm5, %v1266_v13 }
 0x41d   : > { %1696 = vmatpush1.bf16.msra.mxu0 %v3796_v10  ;;  %1727 = vmatprep.mubr.bf16.mxu0 %v4513_v0  ;;  %v3806_v0 = vld [vmem:[#allocation22 + $0x10] sm:$0xff]  }
 0x41e   : > { %v1343_v30 = vsub.f32 %v1341_v24, %v1342_v22  ;;  %1697 = vmatprep.subr.bf16.mxu0 %v3801_v15  ;;  %v5350_v15 = vsub.s32 0, %v5263_v43 }
 0x420   : > { %v1344_v31 = vadd.f32 1e-05, %v1343_v30 }
 0x421   : > { %1698 = vmatpush1.bf16.msra.mxu0 %v3799_v27 }
 0x422   : > { %3835 = vrsqrt.f32 %v1344_v31  ;;  %3342 = vmatprep.subr.bf16.mxu0 %v3803_v41 }
 0x424   : > { %3061 = vmatmul.mubr.msk.bf16.vlgmr.msra.gmra.mrb[12].mxu0 %vm1691_vm6, %v1670_v34 }
 0x425   : > { %3343 = vmatpush3.bf16.msra.mxu0 %v3803_v41 }
 0x426   : > { %3344 = vmatprep.subr.bf16.mxu0 %v3805_v51 }
 0x429   : > { %3345 = vmatpush3.bf16.msra.mxu0 %v3805_v51 }
 0x42a   : > { %3346 = vmatprep.subr.bf16.mxu0 %v3807_v52 }
 0x42c   : > { %v3836_v37 = vpop.eup %3835 }
 0x42d   : > { %3320 = vmatmul.mubr.msk.f32.vlgmr.msra.gmra.mrb[6].mxu1 %vm1347_vm5, %v3836_v37  ;;  %3347 = vmatpush3.bf16.msra.mxu0 %v3807_v52 }
 0x42e   : > { %3323 = vmatpush3.bf16.msra.mxu1 %v3802_v38  ;;  %3348 = vmatprep.subr.bf16.mxu0 %v3809_v54 }
 0x42f   : > { %3324 = vmatprep.subr.bf16.mxu1 %v3804_v45 }
 0x431   : > { %3349 = vmatpush3.bf16.msra.mxu0 %v3809_v54 }
 0x432   : > { %3325 = vmatpush3.bf16.msra.mxu1 %v3804_v45  ;;  %3350 = vmatprep.subr.bf16.mxu0 %v3811_v56 }
 0x433   : > { %3326 = vmatprep.subr.bf16.mxu1 %v3806_v0 }
 0x435   : > { %3351 = vmatpush3.bf16.msra.mxu0 %v3811_v56  ;;  %v3056_v56 = vld [vmem:[#allocation17] ss:$0 sm:$0xff] }
 0x436   : > { %3327 = vmatpush3.bf16.msra.mxu1 %v3806_v0  ;;  %3352 = vmatprep.subr.bf16.mxu0 %v3813_v59  ;;  %v3055_v0 = vld [vmem:[#allocation16] ss:$0 sm:$0xff] }
 0x437   : > { %3328 = vmatprep.subr.bf16.mxu1 %v3808_v53 }
 0x439   : > { %3353 = vmatpush3.bf16.msra.mxu0 %v3813_v59 }
 0x43a   : > { %3329 = vmatpush3.bf16.msra.mxu1 %v3808_v53  ;;  %3354 = vmatprep.subr.bf16.mxu0 %v3815_v61 }
 0x43b   : > { %3330 = vmatprep.subr.bf16.mxu1 %v3810_v55 }
 0x43d   : > { %3355 = vmatpush3.bf16.msra.mxu0 %v3815_v61 }
 0x43e   : > { %3331 = vmatpush3.bf16.msra.mxu1 %v3810_v55  ;;  %3356 = vmatprep.subr.bf16.mxu0 %v3817_v63 }
 0x43f   : > { %3332 = vmatprep.subr.bf16.mxu1 %v3812_v57 }
 0x441   : > { %3357 = vmatpush3.bf16.msra.mxu0 %v3817_v63 }
 0x442   : > { %3333 = vmatpush3.bf16.msra.mxu1 %v3812_v57  ;;  %3516 = vmatprep.subr.bf16.mxu0 %v4514_v17 }
 0x443   : > { %3334 = vmatprep.subr.bf16.mxu1 %v3814_v60 }
 0x446   : > { %3335 = vmatpush3.bf16.msra.mxu1 %v3814_v60 }
 0x447   : > { %3336 = vmatprep.subr.bf16.mxu1 %v3816_v62 }
 0x44a   : > { %3337 = vmatpush3.bf16.msra.mxu1 %v3816_v62 }
 0x44b   : > { %3362 = vmatprep.subr.bf16.mxu1 %v5339_v2 }
 0x4ef   : > { %v1417_v6 = vpop.f32.mrb[10].mxu0 }
 0x4f0   : > { %v3316_v7 = vpop.f32.mrb[11].mxu0  ;;  %v1501_v9 = vrot.slane %v1417_v6, %v5344_v8 }
 0x4f2   : > { %v1502_v13 = vcombine.high %v1501_v9, %v1501_v9  ;;  %v1509_v18 = vrot.slane %v1501_v9, %v5344_v8 }
 0x4f4   : > { %v1516_v22 = vrot.slane %v1502_v13, %v5344_v8  ;;  %v1520_v25 = vrot.slane %v1509_v18, %v5350_v15 }
 0x4f6   : > { %v1524_v30 = vrot.slane %v1516_v22, %v5350_v15  ;;  %v1527_v37 = vsub.f32 %v5307_v49, %v1520_v25  ;;  %v1528_v38 = vsub.f32 %v5309_v50, %v1520_v25  ;;  %v1660_v22 = vsub.s32 1, %v5263_v43 }
 0x4f7   : > { %v1729_v10 = vpop.f32.mrb[12].mxu0 }
 0x4f8   : > { %v5347_v11 = vpop.f32.mrb[13].mxu0  ;;  %v1529_v51 = vsub.f32 %v5303_v47, %v1524_v30  ;;  %v1530_v52 = vsub.f32 %v5305_v48, %v1524_v30 }
 0x4f9   : > { %v1733_v12 = vpop.f32.mrb[14].mxu0 }
 0x4fa   : > { %v1734_v14 = vpop.f32.mrb[15].mxu0 }
 0x4fb   : > { %v1652_v14 = vld [vmem:[#allocation20] sm:$0x3] }
 0x4fc   : > { %v1657_v18 = vrot.slane %v1652_v14, %v5350_v15 }
 0x4fe   : > { %v1730_v30 = vadd.f32 %v1729_v10, %v1657_v18 }
 0x500   : > { %v1490_v24 = vpop.f32.mrb[6].mxu1 }
 0x501   : > { %v1538_v27 = vrot.slane %v1490_v24, %v5344_v8  ;;  %v3321_v28 = vpop.f32.mrb[7].mxu1 }
 0x503   : > { %v1539_v31 = vcombine.high %v1538_v27, %v1538_v27  ;;  %v1546_v34 = vrot.slane %v1538_v27, %v5344_v8 }
 0x505   : > { %v1553_v41 = vrot.slane %v1539_v31, %v5344_v8  ;;  %v1557_v45 = vrot.slane %v1546_v34, %v5350_v15  ;;  %v1661_v31 = vrot.slane %v1652_v14, %v1660_v22 }
 0x507   : > { %v1561_v53 = vrot.slane %v1553_v41, %v5350_v15  ;;  %v1564_v54 = vmul.f32 %v1557_v45, %v1527_v37  ;;  %v1565_v55 = vmul.f32 %v1557_v45, %v1528_v38 }
 0x509   : > { %v1566_v57 = vmul.f32 %v1561_v53, %v1529_v51  ;;  %v1567_v59 = vmul.f32 %v1561_v53, %v1530_v52  ;;  %v1575_v60 = vmul.f32 %v3055_v0, %v1564_v54  ;;  %v1576_v49 = vmul.f32 %v3055_v0, %v1565_v55 }
 0x50a   : > { %v1743_v54 = vrot.slane %v1730_v30, %v5344_v8  ;;  %v1732_v55 = vadd.f32 %v5347_v11, %v1661_v31 }
 0x50b   : > { %v1577_v61 = vmul.f32 %v3055_v0, %v1566_v57  ;;  %v1578_v50 = vmul.f32 %v3055_v0, %v1567_v59  ;;  %v1586_v62 = vadd.f32 %v3056_v56, %v1575_v60  ;;  %v1587_v63 = vadd.f32 %v3056_v56, %v1576_v49 }
 0x50c   : > { %v1744_v10 = vcombine.high %v1743_v54, %v1743_v54  ;;  %v1780_v60 = vrot.slane %v1732_v55, %v5344_v8  ;;  %v1751_v49 = vrot.slane %v1743_v54, %v5344_v8  ;;  %v3823_v54 = vld [vmem:[#allocation22 + $0xa8] sm:$0xff]   ;;  %v3824_v55 = vld [vmem:[#allocation22 + $0xb0] sm:$0xff]  }
 0x50d   : > { %v1588_v3 = vadd.f32 %v3056_v56, %v1577_v61  ;;  %v1589_v4 = vadd.f32 %v3056_v56, %v1578_v50  ;;  %v1590_v5 = vmin.f32 %v1586_v62, 30.0  ;;  %v1591_v47 = vmin.f32 %v1587_v63, 30.0 }
 0x50e   : > { %v1758_v61 = vrot.slane %v1744_v10, %v5344_v8  ;;  %v1781_v50 = vcombine.high %v1780_v60, %v1780_v60 }
 0x50f   : > { %v1592_v6 = vmin.f32 %v1588_v3, 30.0  ;;  %v1593_v7 = vmin.f32 %v1589_v4, 30.0  ;;  %v1594_v48 = vmul.f32 1.442695, %v1590_v5  ;;  %v1596_v9 = vmul.f32 1.442695, %v1591_v47 }
 0x510   : > { %v1762_v5 = vrot.slane %v1751_v49, %v5350_v15  ;;  %v1788_v47 = vrot.slane %v1780_v60, %v5344_v8 }
 0x511   : > { %3837 = vpow2.f32 %v1594_v48  ;;  %v1598_v12 = vmul.f32 1.442695, %v1592_v6  ;;  %v1600_v13 = vmul.f32 1.442695, %v1593_v7 }
 0x512   : > { %3839 = vpow2.f32 %v1596_v9 }
 0x513   : > { %3841 = vpow2.f32 %v1598_v12  ;;  %v1766_v12 = vrot.slane %v1758_v61, %v5350_v15 }
 0x514   : > { %3843 = vpow2.f32 %v1600_v13  ;;  %v1795_v13 = vrot.slane %v1781_v50, %v5344_v8 }
 0x51b   : > { %v3838_v24 = vpop.eup %3837 }
 0x51c   : > { %v3840_v25 = vpop.eup %3839  ;;  %v1602_v27 = vadd.f32 2.0, %v3838_v24 }
 0x51d   : > { %v3842_v28 = vpop.eup %3841  ;;  %v1603_v34 = vadd.f32 2.0, %v3840_v25 }
 0x51e   : > { %v3844_v37 = vpop.eup %3843  ;;  %v1604_v38 = vadd.f32 2.0, %v3842_v28  ;;  %v1606_v41 = vmul.f32 %v3838_v24, %v1602_v27 }
 0x51f   : > { %v1605_v45 = vadd.f32 2.0, %v3844_v37  ;;  %v1607_v51 = vmul.f32 %v3840_v25, %v1603_v34 }
 0x520   : > { %v1608_v0 = vmul.f32 %v3842_v28, %v1604_v38  ;;  %v1614_v52 = vadd.f32 2.0, %v1606_v41  ;;  %v1610_v11 = vmul.f32 %v1606_v41, %v1586_v62  ;;  %v1799_v28 = vrot.slane %v1788_v47, %v5350_v15 }
 0x521   : > { %v1609_v53 = vmul.f32 %v3844_v37, %v1605_v45  ;;  %v1615_v56 = vadd.f32 2.0, %v1607_v51  ;;  %v1611_v7 = vmul.f32 %v1607_v51, %v1587_v63  ;;  %v1803_v63 = vrot.slane %v1795_v13, %v5350_v15 }
 0x522   : > { %v1616_v57 = vadd.f32 2.0, %v1608_v0  ;;  %3845 = vrcp.f32 %v1614_v52  ;;  %v1612_v9 = vmul.f32 %v1608_v0, %v1588_v3  ;;  %v3819_v0 = vld [vmem:[#allocation22 + $0x88] sm:$0xff]   ;;  %v3820_v52 = vld [vmem:[#allocation22 + $0x90] sm:$0xff]  }
 0x523   : > { %v1617_v59 = vadd.f32 2.0, %v1609_v53  ;;  %3847 = vrcp.f32 %v1615_v56  ;;  %v1613_v22 = vmul.f32 %v1609_v53, %v1589_v4  ;;  %v3821_v53 = vld [vmem:[#allocation22 + $0x98] sm:$0xff]  }
 0x524   : > { %3849 = vrcp.f32 %v1616_v57  ;;  %v3825_v56 = vld [vmem:[#allocation22 + $0xb8] sm:$0xff]  }
 0x525   : > { %3851 = vrcp.f32 %v1617_v59 }
 0x52c   : > { %v3846_v6 = vpop.eup %3845 }
 0x52d   : > { %v3848_v48 = vpop.eup %3847  ;;  %v1622_v14 = vmul.f32 %v3846_v6, %v1610_v11 }
 0x52e   : > { %v3850_v18 = vpop.eup %3849  ;;  %v1623_v24 = vmul.f32 %v3848_v48, %v1611_v7 }
 0x52f   : > { %v3852_v25 = vpop.eup %3851  ;;  %v1624_v27 = vmul.f32 %v3850_v18, %v1612_v9  ;;  %v1769_v30 = vmul.f32 %v1762_v5, %v1622_v14 }
 0x530   : > { %v1625_v31 = vmul.f32 %v3852_v25, %v1613_v22  ;;  %v1770_v34 = vmul.f32 %v1762_v5, %v1623_v24 }
 0x531   : > { %v1771_v62 = vmul.f32 %v1766_v12, %v1624_v27  ;;  %v1806_v37 = vadd.f32 %v1799_v28, %v1769_v30 }
 0x532   : > { %v1772_v3 = vmul.f32 %v1766_v12, %v1625_v31  ;;  %v1807_v38 = vadd.f32 %v1799_v28, %v1770_v34  ;;  %v3086_v34 = vld [vmem:[#allocation23] ss:$0 sm:$0xff] }
 0x533   : > { %v1808_v41 = vadd.f32 %v1803_v63, %v1771_v62 }
 0x534   : > { %v1810_v45 = vpack.c.bf16 %v1807_v38, %v1806_v37  ;;  %v1809_v51 = vadd.f32 %v1803_v63, %v1772_v3 }
 0x536   : > { %3338 = vmatprep.mubr.bf16.mxu1 %v1810_v45  ;;  %3358 = vmatprep.mubr.bf16.mxu0 %v1810_v45  ;;  %v1811_v4 = vpack.c.bf16 %v1809_v51, %v1808_v41 }
 0x538   : > { %3339 = vmatmul.mubr.bf16.vlgmr.msra.gmra.mrb[8].mxu1 %v1811_v4  ;;  %3359 = vmatmul.mubr.bf16.vlgmr.msra.gmra.mrb[16].mxu0 %v1811_v4 }
 0x539   : > { %3363 = vmatpush3.bf16.msra.mxu1 %v5339_v2  ;;  %3378 = vmatprep.mubr.bf16.mxu1 %v1810_v45  ;;  %v3822_v2 = vld [vmem:[#allocation22 + $0xa0] sm:$0xff]  }
 0x53a   : > { %3364 = vmatprep.subr.bf16.mxu1 %v3819_v0  ;;  %3518 = vmatpush3.bf16.msra.mxu0 %v5205_v16 }
 0x53b   : > { %3519 = vmatprep.subr.bf16.mxu0 %v4514_v17  ;;  %3414 = vmatprep.mubr.msk.f32.mxu0 %vm4515_vm1, %v4516_v35 }
 0x53d   : > { %3365 = vmatpush3.bf16.msra.mxu1 %v3819_v0 }
 0x53e   : > { %3366 = vmatprep.subr.bf16.mxu1 %v3820_v52  ;;  %3521 = vmatpush3.bf16.msra.mxu0 %v5213_v20 }
 0x53f   : > { %3522 = vmatprep.subr.bf16.mxu0 %v4514_v17 }
 0x541   : > { %3367 = vmatpush3.bf16.msra.mxu1 %v3820_v52 }
 0x542   : > { %3368 = vmatprep.subr.bf16.mxu1 %v3821_v53  ;;  %3524 = vmatpush3.bf16.msra.mxu0 %v5219_v23 }
 0x543   : > { %3525 = vmatprep.subr.bf16.mxu0 %v4514_v17 }
 0x545   : > { %3369 = vmatpush3.bf16.msra.mxu1 %v3821_v53 }
 0x546   : > { %3370 = vmatprep.subr.bf16.mxu1 %v3822_v2  ;;  %3527 = vmatpush3.bf16.msra.mxu0 %v5225_v26 }
 0x547   : > { %3528 = vmatprep.subr.bf16.mxu0 %v4514_v17 }
 0x549   : > { %3371 = vmatpush3.bf16.msra.mxu1 %v3822_v2 }
 0x54a   : > { %3372 = vmatprep.subr.bf16.mxu1 %v3823_v54  ;;  %3530 = vmatpush3.bf16.msra.mxu0 %v5231_v29 }
 0x54b   : > { %3531 = vmatprep.subr.bf16.mxu0 %v4514_v17 }
 0x54d   : > { %3373 = vmatpush3.bf16.msra.mxu1 %v3823_v54 }
 0x54e   : > { %3374 = vmatprep.subr.bf16.mxu1 %v3824_v55  ;;  %3533 = vmatpush3.bf16.msra.mxu0 %v5236_v32 }
 0x54f   : > { %3534 = vmatprep.subr.bf16.mxu0 %v4514_v17 }
 0x551   : > { %3375 = vmatpush3.bf16.msra.mxu1 %v3824_v55 }
 0x552   : > { %3376 = vmatprep.subr.bf16.mxu1 %v3825_v56  ;;  %3536 = vmatpush3.bf16.msra.mxu0 %v5245_v36 }
 0x553   : > { %3537 = vmatprep.subr.bf16.mxu0 %v4514_v17 }
 0x555   : > { %3377 = vmatpush3.bf16.msra.mxu1 %v3825_v56 }
 0x556   : > { %3540 = vmatprep.subr.bf16.mxu1 %v4514_v17  ;;  %3539 = vmatpush3.bf16.msra.mxu0 %v5251_v39 }
 0x557   : > { %3452 = vmatprep.subr.mxu0 %v4516_v35 }
 0x558   : > { %3379 = vmatmul.mubr.bf16.vlgmr.msra.gmra.mrb[12].mxu1 %v1811_v4 }
 0x559   : > { %3542 = vmatpush3.bf16.msra.mxu1 %v5205_v16  ;;  %3449 = vmatprep.mubr.msk.f32.mxu1 %vm4515_vm1, %v4516_v35 }
 0x55a   : > { %3543 = vmatprep.subr.bf16.mxu1 %v4514_v17 }
 0x55d   : > { %3545 = vmatpush3.bf16.msra.mxu1 %v5213_v20 }
 0x55e   : > { %3546 = vmatprep.subr.bf16.mxu1 %v4514_v17 }
 0x561   : > { %3548 = vmatpush3.bf16.msra.mxu1 %v5219_v23 }
 0x562   : > { %3549 = vmatprep.subr.bf16.mxu1 %v4514_v17 }
 0x565   : > { %3551 = vmatpush3.bf16.msra.mxu1 %v5225_v26 }
 0x566   : > { %3552 = vmatprep.subr.bf16.mxu1 %v4514_v17 }
 0x569   : > { %3554 = vmatpush3.bf16.msra.mxu1 %v5231_v29 }
 0x56a   : > { %3555 = vmatprep.subr.bf16.mxu1 %v4514_v17 }
 0x56d   : > { %3557 = vmatpush3.bf16.msra.mxu1 %v5236_v32 }
 0x56e   : > { %3558 = vmatprep.subr.bf16.mxu1 %v4514_v17 }
 0x571   : > { %3560 = vmatpush3.bf16.msra.mxu1 %v5245_v36 }
 0x572   : > { %3561 = vmatprep.subr.bf16.mxu1 %v4514_v17 }
 0x575   : > { %3563 = vmatpush3.bf16.msra.mxu1 %v5251_v39 }
 0x60b   : > { %v3340_v16 = vpop.f32.mrb[8].mxu1  ;;  %v3360_v20 = vpop.f32.mrb[16].mxu0 }
 0x60c   : > { %v1910_v23 = vpop.f32.mrb[9].mxu1  ;;  %v2024_v26 = vpop.f32.mrb[17].mxu0  ;;  %v2155_v29 = vrot.slane %v3340_v16, 7 }
 0x60d   : > { %v2153_v57 = vrot.slane %v1910_v23, 7  ;;  %v3341_v59 = vpop.f32.mrb[10].mxu1  ;;  %v3361_v10 = vpop.f32.mrb[18].mxu0 }
 0x60e   : > { %v2156_v60 = vrot.slane %v3341_v59, 7  ;;  %v1913_v49 = vpop.f32.mrb[11].mxu1  ;;  %v2027_v61 = vpop.f32.mrb[19].mxu0 }
 0x60f   : > { %v2154_v32 = vrot.slane %v1913_v49, 7 }
 0x610   : > { %v2160_v50 = vsel %vm1061_vm2, %v2156_v60, %v2153_v57  ;;  %v2157_v17 = vsel %vm1061_vm2, %v2155_v29, %v2156_v60 }
 0x611   : > { %v2161_v36 = vmul.f32 %v2160_v50, %v5261_v42  ;;  %v2164_v39 = vmul.f32 %v2157_v17, %v5265_v44  ;;  %v2158_v5 = vsel %vm1061_vm2, %v2154_v32, %v2155_v29  ;;  %v2159_v47 = vsel %vm1061_vm2, %v2153_v57, %v2154_v32 }
 0x612   : > { %v2163_v11 = vmul.f32 %v2158_v5, %v5259_v40  ;;  %v2162_v6 = vmul.f32 %v2159_v47, %v5267_v46 }
 0x613   : > { %v2165_v7 = vadd.f32 %v2161_v36, %v2024_v26  ;;  %v2168_v48 = vadd.f32 %v3361_v10, %v2164_v39 }
 0x614   : > { %v2167_v9 = vadd.f32 %v3360_v20, %v2163_v11  ;;  %v2166_v12 = vadd.f32 %v2162_v6, %v2027_v61 }
 0x62b   : > { %v3380_v13 = vpop.f32.mrb[12].mxu1 }
 0x62c   : > { %v2138_v14 = vpop.f32.mrb[13].mxu1  ;;  %v2171_v22 = vrot.slane %v3380_v13, 1 }
 0x62d   : > { %v2169_v18 = vrot.slane %v2138_v14, 1  ;;  %v3381_v42 = vpop.f32.mrb[14].mxu1 }
 0x62e   : > { %v2172_v44 = vrot.slane %v3381_v42, 1  ;;  %v2141_v24 = vpop.f32.mrb[15].mxu1 }
 0x62f   : > { %v2170_v25 = vrot.slane %v2141_v24, 1 }
 0x630   : > { %v2173_v27 = vsel %vm1098_vm3, %v2171_v22, %v2172_v44  ;;  %v2176_v40 = vsel %vm1098_vm3, %v2172_v44, %v2169_v18 }
 0x631   : > { %v2179_v46 = vmul.f32 %v2173_v27, %v5289_v21  ;;  %v2180_v28 = vmul.f32 %v2176_v40, %v5287_v19  ;;  %v2174_v30 = vsel %vm1098_vm3, %v2170_v25, %v2171_v22  ;;  %v2175_v31 = vsel %vm1098_vm3, %v2169_v18, %v2170_v25  ;;  %v3826_v18 = vld [vmem:[#allocation28] sm:$0xff]  }
 0x632   : > { %v2177_v62 = vmul.f32 %v2175_v31, %v5282_v1  ;;  %v2178_v63 = vmul.f32 %v2174_v30, %v5274_v58 }
 0x633   : > { %v2183_v37 = vadd.f32 %v2179_v46, %v2167_v9  ;;  %v2184_v3 = vadd.f32 %v2180_v28, %v2168_v48  ;;  %v3871_v46 = vld [vmem:[%s5145_s28] sm:$0xff]   ;;  %v3872_v28 = vld [vmem:[%s5145_s28 + $0x8] sm:$0xff]  }
 0x634   : > { %v2181_v38 = vadd.f32 %v2177_v62, %v2165_v7  ;;  %v2182_v41 = vadd.f32 %v2178_v63, %v2166_v12 }
 0x635   : > { %v5439_v45 = vadd.f32 %v3086_v34, %v2183_v37  ;;  %v5441_v21 = vadd.f32 %v3086_v34, %v2184_v3 }
 0x636   : > { %v5443_v19 = vadd.f32 %v3086_v34, %v2181_v38  ;;  %v5445_v51 = vadd.f32 %v3086_v34, %v2182_v41 }
 0x637   : > { %v2212_v43 = vmul.f32 %v5439_v45, %v5439_v45  ;;  %v2213_v1 = vmul.f32 %v5441_v21, %v5441_v21  ;;  %v2203_v58 = vadd.f32 %v5441_v21, %v5439_v45 }
 0x638   : > { %v2210_v4 = vmul.f32 %v5443_v19, %v5443_v19  ;;  %v2211_v0 = vmul.f32 %v5445_v51, %v5445_v51  ;;  %v2196_v52 = vadd.f32 %v5445_v51, %v5443_v19 }
 0x639   : > { %v2204_v53 = vrot.slane %v2203_v58, 4  ;;  %v2221_v2 = vadd.f32 %v2213_v1, %v2212_v43 }
 0x63a   : > { %v2197_v54 = vrot.slane %v2196_v52, 4  ;;  %v2214_v55 = vadd.f32 %v2211_v0, %v2210_v4 }
 0x63b   : > { %v2205_v56 = vadd.f32 %v2204_v53, %v2203_v58  ;;  %v2222_v16 = vrot.slane %v2221_v2, 4 }
 0x63c   : > { %v2198_v20 = vadd.f32 %v2197_v54, %v2196_v52  ;;  %v2215_v23 = vrot.slane %v2214_v55, 4 }
 0x63d   : > { %v2206_v26 = vrot.slane %v2205_v56, 2  ;;  %v2223_v57 = vadd.f32 %v2222_v16, %v2221_v2 }
 0x63e   : > { %v2199_v59 = vrot.slane %v2198_v20, 2  ;;  %v2216_v10 = vadd.f32 %v2215_v23, %v2214_v55  ;;  %v3089_v55 = vld [vmem:[#allocation25] ss:$0 sm:$0xff] }
 0x63f   : > { %v2207_v29 = vadd.f32 %v2206_v26, %v2205_v56  ;;  %v2224_v60 = vrot.slane %v2223_v57, 2 }
 0x640   : > { %v2200_v49 = vadd.f32 %v2199_v59, %v2198_v20  ;;  %v2217_v61 = vrot.slane %v2216_v10, 2 }
 0x641   : > { %v2208_v32 = vrot.slane %v2207_v29, 1  ;;  %v2225_v50 = vadd.f32 %v2224_v60, %v2223_v57 }
 0x642   : > { %v2201_v17 = vrot.slane %v2200_v49, 1  ;;  %v2218_v36 = vadd.f32 %v2217_v61, %v2216_v10 }
 0x643   : > { %v2209_v39 = vadd.f32 %v2208_v32, %v2207_v29  ;;  %v2226_v5 = vrot.slane %v2225_v50, 1 }
 0x644   : > { %v2202_v47 = vadd.f32 %v2201_v17, %v2200_v49  ;;  %v2219_v11 = vrot.slane %v2218_v36, 1 }
 0x645   : > { %v2227_v6 = vadd.f32 %v2226_v5, %v2225_v50 }
 0x646   : > { %v2230_v7 = vsel %vm1192_vm4, %v2209_v39, %v2202_v47  ;;  %v2220_v48 = vadd.f32 %v2219_v11, %v2218_v36 }
 0x647   : > { %3415 = vmatmul.mubr.f32.vlgmr.msra.gmra.mrb[20].mxu0 %v2230_v7 }
 0x648   : > { %v2305_v9 = vsel %vm1192_vm4, %v2227_v6, %v2220_v48  ;;  %3453 = vmatpush3.msra.mxu0 %v5329_v33  ;;  %3454 = vmatprep.mubr.msk.f32.mxu0 %vm4515_vm1, %v4516_v35 }
 0x649   : > { %3450 = vmatmul.mubr.f32.vlgmr.msra.gmra.mrb[16].mxu1 %v2305_v9  ;;  %3457 = vmatprep.subr.mxu0 %v4516_v35 }
 0x71a   : > { %v2298_v12 = vpop.f32.mrb[20].mxu0 }
 0x71b   : > { %v2302_v13 = vmul.f32 0.015625, %v2298_v12  ;;  %v3416_v14 = vpop.f32.mrb[21].mxu0 }
 0x71c   : > { %v2373_v42 = vpop.f32.mrb[16].mxu1 }
 0x71d   : > { %v2378_v22 = vmul.f32 %v2302_v13, %v2302_v13  ;;  %v2377_v44 = vmul.f32 0.015625, %v2373_v42  ;;  %v3451_v24 = vpop.f32.mrb[17].mxu1  ;;  %3455 = vmatmul.mubr.msk.f32.vlgmr.msra.gmra.mrb[22].mxu0 %vm1347_vm5, %v2302_v13 }
 0x71e   : > { %3458 = vmatpush3.msra.mxu0 %v5329_v33  ;;  %3459 = vmatprep.mubr.msk.f32.mxu0 %vm4515_vm1, %v4516_v35 }
 0x71f   : > { %v2379_v25 = vsub.f32 %v2377_v44, %v2378_v22  ;;  %3462 = vmatprep.subr.bf16.mxu0 %v3826_v18 }
 0x721   : > { %v2380_v27 = vadd.f32 1e-05, %v2379_v25 }
 0x723   : > { %3853 = vrsqrt.f32 %v2380_v27 }
 0x72d   : > { %v3854_v40 = vpop.eup %3853 }
 0x72e   : > { %3460 = vmatmul.mubr.msk.f32.vlgmr.msra.gmra.mrb[24].mxu0 %vm1347_vm5, %v3854_v40 }
 0x72f   : > { %3463 = vmatpush3.bf16.msra.mxu0 %v3826_v18  ;;  %3464 = vmatprep.mubr.msk.bf16.mxu0 %vm883_vm0, %v3871_v46  ;;  %v3091_v46 = vld [vmem:[#allocation29] ss:$0 sm:$0xff] }
 0x732   : > { %3465 = vmatmul.mubr.msk.bf16.vlgmr.msra.gmra.mrb[28].mxu0 %vm883_vm0, %v3872_v28 }
 0x7f0   : > { %v2451_v30 = vpop.f32.mrb[22].mxu0 }
 0x7f1   : > { %v3456_v31 = vpop.f32.mrb[23].mxu0  ;;  %v2535_v33 = vrot.slane %v2451_v30, %v5344_v8 }
 0x7f3   : > { %v2536_v34 = vcombine.high %v2535_v33, %v2535_v33  ;;  %v2543_v35 = vrot.slane %v2535_v33, %v5344_v8 }
 0x7f5   : > { %v2550_v62 = vrot.slane %v2536_v34, %v5344_v8  ;;  %v2554_v37 = vrot.slane %v2543_v35, %v5350_v15 }
 0x7f7   : > { %v2558_v41 = vrot.slane %v2550_v62, %v5350_v15  ;;  %v2561_v4 = vsub.f32 %v5443_v19, %v2554_v37  ;;  %v2562_v0 = vsub.f32 %v5445_v51, %v2554_v37  ;;  %v3090_v19 = vld [vmem:[#allocation26] ss:$0 sm:$0xff] }
 0x7f9   : > { %v2563_v54 = vsub.f32 %v5439_v45, %v2558_v41  ;;  %v2564_v16 = vsub.f32 %v5441_v21, %v2558_v41 }
 0x801   : > { %v2524_v63 = vpop.f32.mrb[24].mxu0 }
 0x802   : > { %v2572_v3 = vrot.slane %v2524_v63, %v5344_v8  ;;  %v3461_v38 = vpop.f32.mrb[25].mxu0 }
 0x804   : > { %v2573_v43 = vcombine.high %v2572_v3, %v2572_v3  ;;  %v2580_v1 = vrot.slane %v2572_v3, %v5344_v8 }
 0x805   : > { %v5481_v58 = vpop.f32.mrb[28].mxu0 }
 0x806   : > { %v2587_v52 = vrot.slane %v2573_v43, %v5344_v8  ;;  %v2591_v53 = vrot.slane %v2580_v1, %v5350_v15  ;;  %v2709_v2 = vpop.f32.mrb[29].mxu0  ;;  %v2718_v1 = vadd.f32 %v5481_v58, %v3091_v46 }
 0x807   : > { %v5488_v56 = vpop.f32.mrb[30].mxu0  ;;  %v2710_v30 = vadd.f32 %v3091_v46, %v2709_v2 }
 0x808   : > { %v2595_v20 = vrot.slane %v2587_v52, %v5350_v15  ;;  %v2598_v23 = vmul.f32 %v2591_v53, %v2561_v4  ;;  %v2599_v26 = vmul.f32 %v2591_v53, %v2562_v0  ;;  %v2712_v57 = vpop.f32.mrb[31].mxu0  ;;  %v2721_v52 = vadd.f32 %v5488_v56, %v3091_v46 }
 0x809   : > { %v2713_v34 = vadd.f32 %v3091_v46, %v2712_v57 }
 0x80a   : > { %v2600_v59 = vmul.f32 %v2595_v20, %v2563_v54  ;;  %v2601_v51 = vmul.f32 %v2595_v20, %v2564_v16  ;;  %v2609_v10 = vmul.f32 %v3089_v55, %v2598_v23  ;;  %v2610_v8 = vmul.f32 %v3089_v55, %v2599_v26 }
 0x80c   : > { %v2611_v29 = vmul.f32 %v3089_v55, %v2600_v59  ;;  %v2620_v60 = vadd.f32 %v3090_v19, %v2609_v10  ;;  %v2612_v49 = vmul.f32 %v3089_v55, %v2601_v51  ;;  %v2621_v61 = vadd.f32 %v3090_v19, %v2610_v8 }
 0x80e   : > { %v2622_v45 = vadd.f32 %v3090_v19, %v2611_v29  ;;  %v2624_v32 = vmin.f32 %v2620_v60, 30.0  ;;  %v2623_v50 = vadd.f32 %v3090_v19, %v2612_v49  ;;  %v2625_v17 = vmin.f32 %v2621_v61, 30.0 }
 0x810   : > { %v2626_v36 = vmin.f32 %v2622_v45, 30.0  ;;  %v2628_v21 = vmul.f32 1.442695, %v2624_v32  ;;  %v2627_v39 = vmin.f32 %v2623_v50, 30.0  ;;  %v2630_v15 = vmul.f32 1.442695, %v2625_v17 }
 0x812   : > { %v2632_v5 = vmul.f32 1.442695, %v2626_v36  ;;  %3855 = vpow2.f32 %v2628_v21  ;;  %v2634_v47 = vmul.f32 1.442695, %v2627_v39 }
 0x813   : > { %3857 = vpow2.f32 %v2630_v15 }
 0x814   : > { %3859 = vpow2.f32 %v2632_v5 }
 0x815   : > { %3861 = vpow2.f32 %v2634_v47 }
 0x81c   : > { %v3856_v11 = vpop.eup %3855 }
 0x81d   : > { %v3858_v6 = vpop.eup %3857  ;;  %v2636_v7 = vadd.f32 2.0, %v3856_v11 }
 0x81e   : > { %v3860_v48 = vpop.eup %3859  ;;  %v2637_v9 = vadd.f32 2.0, %v3858_v6 }
 0x81f   : > { %v3862_v12 = vpop.eup %3861  ;;  %v2638_v13 = vadd.f32 2.0, %v3860_v48  ;;  %v2640_v14 = vmul.f32 %v3856_v11, %v2636_v7 }
 0x820   : > { %v2639_v18 = vadd.f32 2.0, %v3862_v12  ;;  %v2641_v42 = vmul.f32 %v3858_v6, %v2637_v9 }
 0x821   : > { %v2642_v22 = vmul.f32 %v3860_v48, %v2638_v13  ;;  %v2648_v44 = vadd.f32 2.0, %v2640_v14  ;;  %v2644_v28 = vmul.f32 %v2640_v14, %v2620_v60 }
 0x822   : > { %v2643_v24 = vmul.f32 %v3862_v12, %v2639_v18  ;;  %v2649_v25 = vadd.f32 2.0, %v2641_v42  ;;  %v2645_v33 = vmul.f32 %v2641_v42, %v2621_v61 }
 0x823   : > { %v2650_v27 = vadd.f32 2.0, %v2642_v22  ;;  %3863 = vrcp.f32 %v2648_v44  ;;  %v2646_v62 = vmul.f32 %v2642_v22, %v2622_v45 }
 0x824   : > { %v2651_v40 = vadd.f32 2.0, %v2643_v24  ;;  %3865 = vrcp.f32 %v2649_v25  ;;  %v2647_v3 = vmul.f32 %v2643_v24, %v2623_v50 }
 0x825   : > { %3867 = vrcp.f32 %v2650_v27 }
 0x826   : > { %3869 = vrcp.f32 %v2651_v40 }
 0x82d   : > { %v3864_v31 = vpop.eup %3863 }
 0x82e   : > { %v3866_v35 = vpop.eup %3865  ;;  %v2656_v63 = vmul.f32 %v3864_v31, %v2644_v28 }
 0x82f   : > { %v3868_v37 = vpop.eup %3867  ;;  %v2657_v38 = vmul.f32 %v3866_v35, %v2645_v33 }
 0x830   : > { %v3870_v41 = vpop.eup %3869  ;;  %v2658_v43 = vmul.f32 %v3868_v37, %v2646_v62  ;;  %v2724_v4 = vadd.f32 %v2710_v30, %v2656_v63 }
 0x831   : > { %v2659_v0 = vmul.f32 %v3870_v41, %v2647_v3  ;;  %v2725_v53 = vadd.f32 %v2713_v34, %v2657_v38 }
 0x832   : > { %v2726_v2 = vadd.f32 %v2718_v1, %v2658_v43  ;;  %2728 = vst [vmem:[%s848_s2] sm:$0xff] %v2724_v4 }
 0x833   : > { %v2727_v54 = vadd.f32 %v2721_v52, %v2659_v0  ;;  %2729 = vst [vmem:[%s848_s2 + $0x8] sm:$0xff] %v2725_v53 }
 0x834   : > { %2730 = vst [vmem:[%s848_s2 + $0x10] sm:$0xff] %v2726_v2 }
 0x835   : > { %2731 = vst [vmem:[%s848_s2 + $0x18] sm:$0xff] %v2727_v54 }
 0x836   : > { %4394 = shalt.err (!%p4391_p7)
}
 0x837   : > { %s4395_s28 = scalar_lea.hbm %s5501_s11, 512  ;;  %s4399_s10 = scalar_lea.hbm %s5662_s0, 1024 }
 0x838   : > { %p4396_p9 = scmp.ne.s32.totalorder %s5501_s11, %s4395_s28  ;;  %p4400_p0 = scmp.lt.u32.totalorder %s5501_s11, %s5662_s0 }
 0x839   : > { %p4401_p12 = scmp.lt.u32.totalorder %s4399_s10, %s4395_s28  ;;  %p4403_p1 = scmp.lt.u32.totalorder %s4395_s28, %s5501_s11 }
 0x83a   : > { %p4397_p8 = pnand %p4396_p9, %p5663_p3 }
 0x83b   : > { %p4402_p13 = por %p4401_p12, %p4400_p0 }
 0x83c   : > { %p4398_p11 = pneg %p4397_p8 }
 0x83d   : > { %p4404_p6 = por %p4403_p1, %p4402_p13 }
 0x83f   : > { %p4405_p2 = pnand %p4404_p6, %p4398_p11 }
 0x841   : > { %4408 = shalt.err (!%p4405_p2)
}
 0x842   : > { %s4519_s23 = smov 128   ;;  %s4520_s2 = smov 8  }
 0x843   : > { %3632 = dma.vmem_to_hbm [thread:$0]  (%p5663_p3), %s5495_s30, 512, %s5501_s11, %s2733_s25, %s4519_s23, %s4519_s23, %s4520_s2  }
 0x844 PF: > { %s5664_s6 = sld [smem:[#allocation44_spill]]  ;;  %s5665_s9 = sld [smem:[#allocation47_spill]] }
 0x845   : > { %p5666_p4 = scmp.ne.s32.totalorder %s5634_s21, 0 }
 0x84a   : > { %s2762_s26 = sand.u32 1, %s5664_s6   ;;  %p5667_p10 = scmp.ge.s32.totalorder %s5665_s9, 2 }
 0x84b   : > { %s2763_s20 = scalar_lea.sflag [#allocation4], %s2762_s26 }
 0x84c   : > { %p3691_p5 = pnand %p5667_p10, %p5666_p4 }
 0x84e   : > { %4470 = dma.done.wait (!%p3691_p5), %s2763_s20, 512  }
 0x84f   : > { %4472 = vsyncadd (!%p3691_p5), %s2763_s20, 4294966784  ;;  %s5668_s27 = sld [smem:[#allocation45_spill]]  ;;  %s5669_s28 = sld [smem:[#allocation46_spill]] }
 0x850   : > { %p42_p7 = scmp.ge.s32.totalorder %s5016_s1, 4   ;;  %s5670_s29 = smov %s5027_s17 }
 0x851   : > { %s5671_s30 = smov %s5016_s1 }
 0x852   :  { %44 = sbr.rel (!%p42_p7) target bundleno = 30 (0x1e), region = 218 }
 0x859   :  { %2768 = vsyncpa [#allocation3], 1 }
 0x85a   :  { %2770 = vsyncpa [#allocation3 + $0x1], 1 }
 0x85b   :  { %2771 = vsyncpa [#allocation6], 1 }
 0x85c   :  { %2773 = vsyncpa [#allocation6 + $0x1], 1 }
 0x85d   :  { %2774 = vsyncpa [#allocation9], 1 }
 0x85e   :  { %2775 = vsyncpa [#allocation12], 1 }
 0x85f   :  { %2776 = vsyncpa [#allocation15], 1 }
 0x860   :  { %2777 = vsyncpa [#allocation18], 1 }
 0x861   :  { %2778 = vsyncpa [#allocation21], 1 }
 0x862   :  { %2779 = vsyncpa [#allocation24], 1 }
 0x863   :  { %2780 = vsyncpa [#allocation27], 1 }
 0x864   :  { %2781 = vsyncpa [#allocation30], 1 }
 0x865   :  { %2782 = vsyncpa [#allocation4], 1 }
 0x866   :  { %2784 = vsyncpa [#allocation4 + $0x1], 1 }

</bundles_post_ra>
